<compile_context>
chip_gen: v5e
topology: v5e:2x2
jax: 0.10.0
libtpu: 0.0.40
codegen_flags: <defaults>
</compile_context>

<pallas_src>
import functools
import math

import jax
import jax.numpy as jnp
from jax import lax
from jax.experimental import pallas as pl
from jax.experimental.pallas import tpu as pltpu

# ----------------------------- small RoBERTa config -----------------------------
# TODO(synk): real roberta-large (H=1024, FFN=4096) needs lane-aligned (x128)
# dims + an inner K/N weight pipeline to fit v7x's 64 MiB VMEM; toy config kept.
VOCAB = 100
MAX_POS = 64
HIDDEN = 32
NUM_HEADS = 4
HEAD_DIM = HIDDEN // NUM_HEADS
INTERMEDIATE = 64
NUM_LAYERS = 2
NUM_LABELS = 2
LN_EPS = 1e-5


# ----------------------------- in-kernel helpers --------------------------------
def _layernorm(x, g, b):
    mean = jnp.mean(x, axis=-1, keepdims=True)
    var = jnp.mean((x - mean) * (x - mean), axis=-1, keepdims=True)
    return (x - mean) * lax.rsqrt(var + LN_EPS) * g + b


def _gelu(x):
    # TODO(synk): HF RoBERTa uses exact erf-based GELU; tanh approximation kept
    # for guaranteed Mosaic lowering (harmless with the synthetic weights).
    c = math.sqrt(2.0 / math.pi)
    return 0.5 * x * (1.0 + jnp.tanh(c * (x + 0.044715 * x * x * x)))


# ----------------------------- fused model kernel -------------------------------
def _ruletaker_kernel(*refs, B, S, with_loss):
    """One grid step == one transformer layer; head+CE fused into the last step."""
    if with_loss:
        (emb_hbm, maskadd_ref, eg_ref, eb_ref,
         wqkv_ref, bqkv_ref, wo_ref, bo_ref, l1g_ref, l1b_ref,
         w1_ref, b1_ref, w2_ref, b2_ref, l2g_ref, l2b_ref,
         dw_ref, db_ref, ow_ref, ob_ref, y_ref,
         logits_ref, loss_ref, x_scr, attn_scr, dma_sem) = refs
    else:
        (emb_hbm, maskadd_ref, eg_ref, eb_ref,
         wqkv_ref, bqkv_ref, wo_ref, bo_ref, l1g_ref, l1b_ref,
         w1_ref, b1_ref, w2_ref, b2_ref, l2g_ref, l2b_ref,
         dw_ref, db_ref, ow_ref, ob_ref,
         logits_ref, x_scr, attn_scr, dma_sem) = refs
        y_ref = loss_ref = None

    layer = pl.program_id(0)

    # Layer 0: DMA embeddings HBM -> resident activation scratch, fused emb-LN.
    @pl.when(layer == 0)
    def _():
        cp = pltpu.make_async_copy(emb_hbm, x_scr, dma_sem)
        cp.start()
        cp.wait()
        x_scr[...] = _layernorm(x_scr[...], eg_ref[...], eb_ref[...])

    x = x_scr[...]                       # (M, H) resident activation, f32
    mask_add = maskadd_ref[...]          # (B, S) additive mask (built in wrapper)

    # Fused QKV projection: single (M,H) @ (H,3H) bf16 matmul, f32 accumulate.
    qkv = jnp.dot(x.astype(jnp.bfloat16), wqkv_ref[0],
                  preferred_element_type=jnp.float32) + bqkv_ref[0]
    q = qkv[:, 0 * HIDDEN:1 * HIDDEN]
    k = qkv[:, 1 * HIDDEN:2 * HIDDEN]
    v = qkv[:, 2 * HIDDEN:3 * HIDDEN]

    # Multi-head self-attention; head outputs written straight into a VMEM slab
    # (no concatenates / relayouts, no live head intermediates).
    scale = 1.0 / math.sqrt(HEAD_DIM)
    for b in range(B):                   # static, unrolled
        r0 = b * S
        madd = mask_add[b:b + 1, :]      # (1, S), reused for all heads of batch b
        for h in range(NUM_HEADS):       # static, unrolled
            c0 = h * HEAD_DIM
            qh = q[r0:r0 + S, c0:c0 + HEAD_DIM]
            kh = k[r0:r0 + S, c0:c0 + HEAD_DIM]
            vh = v[r0:r0 + S, c0:c0 + HEAD_DIM]
            sc = lax.dot_general(qh, kh, (((1,), (1,)), ((), ())),
                                 preferred_element_type=jnp.float32) * scale
            sc = sc + madd
            sc = sc - jnp.max(sc, axis=-1, keepdims=True)
            p = jnp.exp(sc)
            p = p * pl.reciprocal(jnp.sum(p, axis=-1, keepdims=True), approx=True)
            attn_scr[r0:r0 + S, c0:c0 + HEAD_DIM] = jnp.dot(
                p, vh, preferred_element_type=jnp.float32)

    attn = attn_scr[...]                                           # (M, H)

    # Attention output projection + residual LayerNorm.
    attn_out = jnp.dot(attn.astype(jnp.bfloat16), wo_ref[0],
                       preferred_element_type=jnp.float32) + bo_ref[0]
    x = _layernorm(attn_out + x, l1g_ref[0], l1b_ref[0])

    # FFN + residual LayerNorm.
    hidden = _gelu(jnp.dot(x.astype(jnp.bfloat16), w1_ref[0],
                           preferred_element_type=jnp.float32) + b1_ref[0])
    ffn = jnp.dot(hidden.astype(jnp.bfloat16), w2_ref[0],
                  preferred_element_type=jnp.float32) + b2_ref[0]
    x = _layernorm(ffn + x, l2g_ref[0], l2b_ref[0])
    x_scr[...] = x

    # Last layer: fused classification head (+ CrossEntropyLoss).
    @pl.when(layer == NUM_LAYERS - 1)
    def _():
        cls = x_scr[pl.ds(0, B, stride=S), :]                      # (B, H) strided CLS gather
        hc = jnp.tanh(jnp.dot(cls, dw_ref[...],
                              preferred_element_type=jnp.float32) + db_ref[...])
        logits = jnp.dot(hc, ow_ref[...],
                         preferred_element_type=jnp.float32) + ob_ref[...]
        logits_ref[...] = logits.astype(logits_ref.dtype)
        if with_loss:
            labels = y_ref[...]                                    # (B, 1) int32
            onehot = (lax.broadcasted_iota(jnp.int32, (B, NUM_LABELS), 1)
                      == labels).astype(jnp.float32)
            m = jnp.max(logits, axis=-1, keepdims=True)
            lse = m + jnp.log(jnp.sum(jnp.exp(logits - m), axis=-1, keepdims=True))
            nll = lse - jnp.sum(onehot * logits, axis=-1, keepdims=True)
            loss_ref[...] = jnp.full((1, 1), jnp.sum(nll) / B, dtype=jnp.float32)


# ----------------------------- model forward (wrapper) --------------------------
def ruletaker_forward(params, input_ids, attention_mask, y=None):
    B, S = input_ids.shape
    M = B * S
    mask_i = attention_mask.astype(jnp.int32)
    # RoBERTa-style position ids (padded tokens pinned to the padding position).
    position_ids = jnp.cumsum(mask_i, axis=1) * mask_i + 1
    # TODO(synk): data-dependent embedding gather stays as XLA glue (jnp.take).
    emb = (jnp.take(params["word_emb"], input_ids, axis=0)
           + jnp.take(params["pos_emb"], position_ids, axis=0)
           + params["type_emb"][0][None, None, :])                 # (B, S, H)
    emb2 = emb.reshape(M, HIDDEN).astype(jnp.float32)
    mask_add = (1.0 - attention_mask.astype(jnp.float32)) * -1e9   # additive, built once

    with_loss = y is not None

    in_specs = [
        pl.BlockSpec(memory_space=pl.ANY),                              # emb (stays in HBM)
        pl.BlockSpec((B, S), lambda l: (0, 0)),                         # additive mask
        pl.BlockSpec((1, HIDDEN), lambda l: (0, 0)),                    # emb LN gamma
        pl.BlockSpec((1, HIDDEN), lambda l: (0, 0)),                    # emb LN beta
        pl.BlockSpec((1, HIDDEN, 3 * HIDDEN), lambda l: (l, 0, 0)),     # wqkv (stacked, bf16)
        pl.BlockSpec((1, 1, 3 * HIDDEN), lambda l: (l, 0, 0)),          # bqkv
        pl.BlockSpec((1, HIDDEN, HIDDEN), lambda l: (l, 0, 0)),         # wo (bf16)
        pl.BlockSpec((1, 1, HIDDEN), lambda l: (l, 0, 0)),              # bo
        pl.BlockSpec((1, 1, HIDDEN), lambda l: (l, 0, 0)),              # ln1 gamma
        pl.BlockSpec((1, 1, HIDDEN), lambda l: (l, 0, 0)),              # ln1 beta
        pl.BlockSpec((1, HIDDEN, INTERMEDIATE), lambda l: (l, 0, 0)),   # w1 (bf16)
        pl.BlockSpec((1, 1, INTERMEDIATE), lambda l: (l, 0, 0)),        # b1
        pl.BlockSpec((1, INTERMEDIATE, HIDDEN), lambda l: (l, 0, 0)),   # w2 (bf16)
        pl.BlockSpec((1, 1, HIDDEN), lambda l: (l, 0, 0)),              # b2
        pl.BlockSpec((1, 1, HIDDEN), lambda l: (l, 0, 0)),              # ln2 gamma
        pl.BlockSpec((1, 1, HIDDEN), lambda l: (l, 0, 0)),              # ln2 beta
        pl.BlockSpec((HIDDEN, HIDDEN), lambda l: (0, 0)),               # cls dense w
        pl.BlockSpec((1, HIDDEN), lambda l: (0, 0)),                    # cls dense b
        pl.BlockSpec((HIDDEN, NUM_LABELS), lambda l: (0, 0)),           # cls out w
        pl.BlockSpec((1, NUM_LABELS), lambda l: (0, 0)),                # cls out b
    ]
    args = [emb2, mask_add,
            params["emb_ln_g"], params["emb_ln_b"],
            params["wqkv"], params["bqkv"], params["wo"], params["bo"],
            params["ln1_g"], params["ln1_b"],
            params["w1"], params["b1"], params["w2"], params["b2"],
            params["ln2_g"], params["ln2_b"],
            params["cls_dense_w"], params["cls_dense_b"],
            params["cls_out_w"], params["cls_out_b"]]

    if with_loss:
        in_specs.append(pl.BlockSpec((B, 1), lambda l: (0, 0)))         # labels
        args.append(y.reshape(B, 1).astype(jnp.int32))
        out_shape = (jax.ShapeDtypeStruct((B, NUM_LABELS), jnp.float32),
                     jax.ShapeDtypeStruct((1, 1), jnp.float32))
        out_specs = (pl.BlockSpec((B, NUM_LABELS), lambda l: (0, 0)),
                     pl.BlockSpec((1, 1), lambda l: (0, 0)))
    else:
        out_shape = jax.ShapeDtypeStruct((B, NUM_LABELS), jnp.float32)
        out_specs = pl.BlockSpec((B, NUM_LABELS), lambda l: (0, 0))

    # Explicit scoped-VMEM budget (review item): 2x (M,H) activation slabs
    # (lane-padded) + double-buffered bf16 per-layer weights, with generous
    # headroom for small padded params and Mosaic internal scratch.
    act_bytes = 2 * M * max(HIDDEN, 128) * 4
    layer_w_bytes = 2 * (HIDDEN * 3 * HIDDEN + HIDDEN * HIDDEN
                         + HIDDEN * INTERMEDIATE + INTERMEDIATE * HIDDEN)   # bf16
    vmem_limit = int(max(8 * (act_bytes + 2 * layer_w_bytes), 4 * 1024 * 1024))

    result = pl.pallas_call(
        functools.partial(_ruletaker_kernel, B=B, S=S, with_loss=with_loss),
        out_shape=out_shape,
        grid=(NUM_LAYERS,),
        in_specs=in_specs,
        out_specs=out_specs,
        scratch_shapes=[pltpu.VMEM((M, HIDDEN), jnp.float32),    # resident activation
                        pltpu.VMEM((M, HIDDEN), jnp.float32),    # attention output slab
                        pltpu.SemaphoreType.DMA(())],            # emb DMA semaphore
        compiler_params=pltpu.CompilerParams(
            # Layer axis carries the activation -> must stay sequential.
            dimension_semantics=("arbitrary",),
            vmem_limit_bytes=vmem_limit),
    )(*args)

    if with_loss:
        logits, loss = result
        return (loss[0, 0], logits)      # == (loss,) + (logits,)  (outputs[2:] empty)
    return (result,)


# ----------------------------- parameter init (deterministic) -------------------
def init_params(seed=0):
    key = jax.random.PRNGKey(seed)
    keys = iter(jax.random.split(key, 64))

    def nrm(shape):
        return 0.02 * jax.random.normal(next(keys), shape, dtype=jnp.float32)

    p = {
        "word_emb": nrm((VOCAB, HIDDEN)),
        "pos_emb": nrm((MAX_POS, HIDDEN)),
        "type_emb": nrm((1, HIDDEN)),
        "emb_ln_g": jnp.ones((1, HIDDEN), jnp.float32),
        "emb_ln_b": jnp.zeros((1, HIDDEN), jnp.float32),
        # RobertaClassificationHead: dense (H,H)+tanh, out_proj (H, num_labels)
        "cls_dense_w": nrm((HIDDEN, HIDDEN)),
        "cls_dense_b": jnp.zeros((1, HIDDEN), jnp.float32),
        "cls_out_w": nrm((HIDDEN, NUM_LABELS)),
        "cls_out_b": jnp.zeros((1, NUM_LABELS), jnp.float32),
    }
    wqkv, bqkv, wo, bo = [], [], [], []
    l1g, l1b, w1, b1, w2, b2, l2g, l2b = [], [], [], [], [], [], [], []
    for _ in range(NUM_LAYERS):
        wq, wk, wv = nrm((HIDDEN, HIDDEN)), nrm((HIDDEN, HIDDEN)), nrm((HIDDEN, HIDDEN))
        wqkv.append(jnp.concatenate([wq, wk, wv], axis=1))          # (H, 3H) fused
        bqkv.append(jnp.zeros((1, 3 * HIDDEN), jnp.float32))
        wo.append(nrm((HIDDEN, HIDDEN)))
        bo.append(jnp.zeros((1, HIDDEN), jnp.float32))
        l1g.append(jnp.ones((1, HIDDEN), jnp.float32))
        l1b.append(jnp.zeros((1, HIDDEN), jnp.float32))
        w1.append(nrm((HIDDEN, INTERMEDIATE)))
        b1.append(jnp.zeros((1, INTERMEDIATE), jnp.float32))
        w2.append(nrm((INTERMEDIATE, HIDDEN)))
        b2.append(jnp.zeros((1, HIDDEN), jnp.float32))
        l2g.append(jnp.ones((1, HIDDEN), jnp.float32))
        l2b.append(jnp.zeros((1, HIDDEN), jnp.float32))
    # Matmul weights stored in bf16 (half the DMA bytes / double-buffered VMEM);
    # biases & LayerNorm params stay f32 (elementwise math stays f32, v5e-safe).
    p["wqkv"], p["bqkv"] = jnp.stack(wqkv).astype(jnp.bfloat16), jnp.stack(bqkv)
    p["wo"], p["bo"] = jnp.stack(wo).astype(jnp.bfloat16), jnp.stack(bo)
    p["ln1_g"], p["ln1_b"] = jnp.stack(l1g), jnp.stack(l1b)
    p["w1"], p["b1"] = jnp.stack(w1).astype(jnp.bfloat16), jnp.stack(b1)
    p["w2"], p["b2"] = jnp.stack(w2).astype(jnp.bfloat16), jnp.stack(b2)
    p["ln2_g"], p["ln2_b"] = jnp.stack(l2g), jnp.stack(l2b)
    return p


# ----------------------------- driver --------------------------------------------
if __name__ == "__main__":
    # TODO(synk): pretrained RoBERTa-large weights + RobertaTokenizer have no Pallas
    # equivalent; replaced by a deterministic small synthetic encoder of identical structure.
    params = init_params(seed=0)

    key = jax.random.PRNGKey(0)
    B, S = 2, 8
    kid, _ = jax.random.split(key)
    input_ids = jax.random.randint(kid, (B, S), 0, VOCAB, dtype=jnp.int32)
    attention_mask = jnp.array([[1, 1, 1, 1, 1, 1, 1, 1],
                                [1, 1, 1, 1, 1, 1, 0, 0]], dtype=jnp.int32)
    y = jnp.array([0, 1], dtype=jnp.int32)

    loss, logits = ruletaker_forward(params, input_ids, attention_mask, y)
    jax.block_until_ready((loss, logits))

    # Also exercise the inference-only path (no labels -> logits only).
    (logits_only,) = ruletaker_forward(params, input_ids, attention_mask)
    jax.block_until_ready(logits_only)

    assert logits.shape == (B, NUM_LABELS)
    assert logits_only.shape == (B, NUM_LABELS)
    assert loss.shape == ()
    print("KERNEL_OK")
</pallas_src>

<mosaic_0001>
module attributes {stable_mosaic.version = 11 : i64} {
  func.func @_ruletaker_kernel(%arg0: i32, %arg1: memref<16x32xf32, #tpu.memory_space<any>>, %arg2: memref<2x8xf32, #tpu.memory_space<vmem>>, %arg3: memref<1x32xf32, #tpu.memory_space<vmem>>, %arg4: memref<1x32xf32, #tpu.memory_space<vmem>>, %arg5: memref<1x32x96xbf16, #tpu.memory_space<vmem>>, %arg6: memref<1x1x96xf32, #tpu.memory_space<vmem>>, %arg7: memref<1x32x32xbf16, #tpu.memory_space<vmem>>, %arg8: memref<1x1x32xf32, #tpu.memory_space<vmem>>, %arg9: memref<1x1x32xf32, #tpu.memory_space<vmem>>, %arg10: memref<1x1x32xf32, #tpu.memory_space<vmem>>, %arg11: memref<1x32x64xbf16, #tpu.memory_space<vmem>>, %arg12: memref<1x1x64xf32, #tpu.memory_space<vmem>>, %arg13: memref<1x64x32xbf16, #tpu.memory_space<vmem>>, %arg14: memref<1x1x32xf32, #tpu.memory_space<vmem>>, %arg15: memref<1x1x32xf32, #tpu.memory_space<vmem>>, %arg16: memref<1x1x32xf32, #tpu.memory_space<vmem>>, %arg17: memref<32x32xf32, #tpu.memory_space<vmem>>, %arg18: memref<1x32xf32, #tpu.memory_space<vmem>>, %arg19: memref<32x2xf32, #tpu.memory_space<vmem>>, %arg20: memref<1x2xf32, #tpu.memory_space<vmem>>, %arg21: memref<2x1xi32, #tpu.memory_space<vmem>>, %arg22: memref<2x2xf32, #tpu.memory_space<vmem>>, %arg23: memref<1x1xf32, #tpu.memory_space<vmem>>, %arg24: memref<16x32xf32, #tpu.memory_space<vmem>>, %arg25: memref<16x32xf32, #tpu.memory_space<vmem>>, %arg26: memref<!tpu.dma_semaphore, #tpu.memory_space<semaphore_mem>>) attributes {dimension_semantics = [#tpu.dimension_semantics<arbitrary>], iteration_bounds = array<i64: 2>, scalar_prefetch = 0 : i64, scratch_operands = 3 : i64, tpu.core_type = #tpu.core_type<tc>, window_params = [{}, {pipeline_mode = #tpu.pipeline_mode<synchronous>, transform_indices = @transform_1, window_bounds = array<i64: 2, 8>}, {pipeline_mode = #tpu.pipeline_mode<synchronous>, transform_indices = @transform_2, window_bounds = array<i64: 1, 32>}, {pipeline_mode = #tpu.pipeline_mode<synchronous>, transform_indices = @transform_3, window_bounds = array<i64: 1, 32>}, {transform_indices = @transform_4, window_bounds = array<i64: 1, 32, 96>}, {transform_indices = @transform_5, window_bounds = array<i64: 1, 1, 96>}, {transform_indices = @transform_6, window_bounds = array<i64: 1, 32, 32>}, {transform_indices = @transform_7, window_bounds = array<i64: 1, 1, 32>}, {transform_indices = @transform_8, window_bounds = array<i64: 1, 1, 32>}, {transform_indices = @transform_9, window_bounds = array<i64: 1, 1, 32>}, {transform_indices = @transform_10, window_bounds = array<i64: 1, 32, 64>}, {transform_indices = @transform_11, window_bounds = array<i64: 1, 1, 64>}, {transform_indices = @transform_12, window_bounds = array<i64: 1, 64, 32>}, {transform_indices = @transform_13, window_bounds = array<i64: 1, 1, 32>}, {transform_indices = @transform_14, window_bounds = array<i64: 1, 1, 32>}, {transform_indices = @transform_15, window_bounds = array<i64: 1, 1, 32>}, {pipeline_mode = #tpu.pipeline_mode<synchronous>, transform_indices = @transform_16, window_bounds = array<i64: 32, 32>}, {pipeline_mode = #tpu.pipeline_mode<synchronous>, transform_indices = @transform_17, window_bounds = array<i64: 1, 32>}, {pipeline_mode = #tpu.pipeline_mode<synchronous>, transform_indices = @transform_18, window_bounds = array<i64: 32, 2>}, {pipeline_mode = #tpu.pipeline_mode<synchronous>, transform_indices = @transform_19, window_bounds = array<i64: 1, 2>}, {pipeline_mode = #tpu.pipeline_mode<synchronous>, transform_indices = @transform_20, window_bounds = array<i64: 2, 1>}, {pipeline_mode = #tpu.pipeline_mode<synchronous>, transform_indices = @transform_21, window_bounds = array<i64: 2, 2>}, {pipeline_mode = #tpu.pipeline_mode<synchronous>, transform_indices = @transform_22, window_bounds = array<i64: 1, 1>}]} {
    %c0_i32 = arith.constant 0 : i32
    %0 = arith.cmpi eq, %arg0, %c0_i32 : i32
    %1 = arith.extui %0 : i1 to i32
    %c0_i32_0 = arith.constant 0 : i32
    %2 = arith.cmpi ne, %1, %c0_i32_0 : i32
    scf.if %2 {
      tpu.enqueue_dma source(%arg1 : memref<16x32xf32, #tpu.memory_space<any>>) target(%arg24 : memref<16x32xf32, #tpu.memory_space<vmem>>) target_semaphore(%arg26 : memref<!tpu.dma_semaphore, #tpu.memory_space<semaphore_mem>>)
      tpu.wait_dma2 semaphore(%arg26 : memref<!tpu.dma_semaphore, #tpu.memory_space<semaphore_mem>>) src(%arg1 : memref<16x32xf32, #tpu.memory_space<any>>) dst(%arg24 : memref<16x32xf32, #tpu.memory_space<vmem>>)
      %c0_115 = arith.constant 0 : index
      %c0_116 = arith.constant 0 : index
      %278 = vector.load %arg24[%c0_115, %c0_116] : memref<16x32xf32, #tpu.memory_space<vmem>>, vector<16x32xf32>
      %c0_117 = arith.constant 0 : index
      %c0_118 = arith.constant 0 : index
      %279 = vector.load %arg3[%c0_117, %c0_118] : memref<1x32xf32, #tpu.memory_space<vmem>>, vector<1x32xf32>
      %c0_119 = arith.constant 0 : index
      %c0_120 = arith.constant 0 : index
      %280 = vector.load %arg4[%c0_119, %c0_120] : memref<1x32xf32, #tpu.memory_space<vmem>>, vector<1x32xf32>
      %cst_121 = arith.constant dense<0.000000e+00> : vector<16xf32>
      %281 = vector.multi_reduction <add>, %278, %cst_121 [1] : vector<16x32xf32> to vector<16xf32>
      %282 = vector.shape_cast %281 : vector<16xf32> to vector<16x1xf32>
      %cst_122 = arith.constant 3.200000e+01 : f32
      %283 = vector.broadcast %cst_122 : f32 to vector<16x1xf32>
      %284 = arith.divf %282, %283 : vector<16x1xf32>
      %285 = vector.broadcast %284 : vector<16x1xf32> to vector<16x32xf32>
      %286 = arith.subf %278, %285 : vector<16x32xf32>
      %287 = vector.broadcast %284 : vector<16x1xf32> to vector<16x32xf32>
      %288 = arith.subf %278, %287 : vector<16x32xf32>
      %289 = arith.mulf %286, %288 : vector<16x32xf32>
      %cst_123 = arith.constant dense<0.000000e+00> : vector<16xf32>
      %290 = vector.multi_reduction <add>, %289, %cst_123 [1] : vector<16x32xf32> to vector<16xf32>
      %291 = vector.shape_cast %290 : vector<16xf32> to vector<16x1xf32>
      %cst_124 = arith.constant 3.200000e+01 : f32
      %292 = vector.broadcast %cst_124 : f32 to vector<16x1xf32>
      %293 = arith.divf %291, %292 : vector<16x1xf32>
      %294 = vector.broadcast %284 : vector<16x1xf32> to vector<16x32xf32>
      %295 = arith.subf %278, %294 : vector<16x32xf32>
      %cst_125 = arith.constant 9.99999974E-6 : f32
      %296 = vector.broadcast %cst_125 : f32 to vector<16x1xf32>
      %297 = arith.addf %293, %296 : vector<16x1xf32>
      %298 = math.rsqrt %297 : vector<16x1xf32>
      %299 = vector.broadcast %298 : vector<16x1xf32> to vector<16x32xf32>
      %300 = arith.mulf %295, %299 : vector<16x32xf32>
      %301 = vector.broadcast %279 : vector<1x32xf32> to vector<16x32xf32>
      %302 = arith.mulf %300, %301 : vector<16x32xf32>
      %303 = vector.broadcast %280 : vector<1x32xf32> to vector<16x32xf32>
      %304 = arith.addf %302, %303 : vector<16x32xf32>
      %c0_126 = arith.constant 0 : index
      %c0_127 = arith.constant 0 : index
      %305 = vector.load %arg24[%c0_126, %c0_127] : memref<16x32xf32, #tpu.memory_space<vmem>>, vector<16x32xf32>
      tpu.vector_store %arg24[%c0_126, %c0_127], %304 {strides = array<i32>} : memref<16x32xf32, #tpu.memory_space<vmem>>, vector<16x32xf32>,
    } else {
    }
    %c0 = arith.constant 0 : index
    %c0_1 = arith.constant 0 : index
    %3 = vector.load %arg24[%c0, %c0_1] : memref<16x32xf32, #tpu.memory_space<vmem>>, vector<16x32xf32>
    %c0_2 = arith.constant 0 : index
    %c0_3 = arith.constant 0 : index
    %4 = vector.load %arg2[%c0_2, %c0_3] : memref<2x8xf32, #tpu.memory_space<vmem>>, vector<2x8xf32>
    %5 = arith.truncf %3 : vector<16x32xf32> to vector<16x32xbf16>
    %c0_4 = arith.constant 0 : index
    %c0_5 = arith.constant 0 : index
    %c0_6 = arith.constant 0 : index
    %6 = vector.load %arg5[%c0_4, %c0_5, %c0_6] : memref<1x32x96xbf16, #tpu.memory_space<vmem>>, vector<1x32x96xbf16>
    %7 = vector.shape_cast %6 : vector<1x32x96xbf16> to vector<32x96xbf16>
    %cst = arith.constant dense<0.000000e+00> : vector<16x96xf32>
    %8 = tpu.matmul %5, %7, %cst {dimension_numbers = #tpu.dot_dimension_numbers<[1], [0], [0], [1], [0, 0, 1, 1], [], []>} : vector<16x32xbf16>, vector<32x96xbf16>, vector<16x96xf32> -> vector<16x96xf32>
    %c0_7 = arith.constant 0 : index
    %c0_8 = arith.constant 0 : index
    %c0_9 = arith.constant 0 : index
    %9 = vector.load %arg6[%c0_7, %c0_8, %c0_9] : memref<1x1x96xf32, #tpu.memory_space<vmem>>, vector<1x1x96xf32>
    %10 = vector.shape_cast %9 : vector<1x1x96xf32> to vector<1x96xf32>
    %11 = vector.broadcast %10 : vector<1x96xf32> to vector<16x96xf32>
    %12 = arith.addf %8, %11 : vector<16x96xf32>
    %13 = vector.extract_strided_slice %12 {offsets = [0, 0], sizes = [16, 32], strides = [1, 1]} : vector<16x96xf32> to vector<16x32xf32>
    %14 = vector.extract_strided_slice %12 {offsets = [0, 32], sizes = [16, 32], strides = [1, 1]} : vector<16x96xf32> to vector<16x32xf32>
    %15 = vector.extract_strided_slice %12 {offsets = [0, 64], sizes = [16, 32], strides = [1, 1]} : vector<16x96xf32> to vector<16x32xf32>
    %16 = vector.extract_strided_slice %4 {offsets = [0, 0], sizes = [1, 8], strides = [1, 1]} : vector<2x8xf32> to vector<1x8xf32>
    %17 = vector.extract_strided_slice %13 {offsets = [0, 0], sizes = [8, 8], strides = [1, 1]} : vector<16x32xf32> to vector<8x8xf32>
    %18 = vector.extract_strided_slice %14 {offsets = [0, 0], sizes = [8, 8], strides = [1, 1]} : vector<16x32xf32> to vector<8x8xf32>
    %19 = vector.extract_strided_slice %15 {offsets = [0, 0], sizes = [8, 8], strides = [1, 1]} : vector<16x32xf32> to vector<8x8xf32>
    %cst_10 = arith.constant dense<0.000000e+00> : vector<8x8xf32>
    %20 = tpu.matmul %17, %18, %cst_10 {dimension_numbers = #tpu.dot_dimension_numbers<[1], [1], [0], [0], [0, 0, 1, 0], [], []>} : vector<8x8xf32>, vector<8x8xf32>, vector<8x8xf32> -> vector<8x8xf32>
    %cst_11 = arith.constant 0.353553385 : f32
    %21 = vector.broadcast %cst_11 : f32 to vector<8x8xf32>
    %22 = arith.mulf %20, %21 : vector<8x8xf32>
    %23 = vector.broadcast %16 : vector<1x8xf32> to vector<8x8xf32>
    %24 = arith.addf %22, %23 : vector<8x8xf32>
    %cst_12 = arith.constant dense<0xFF800000> : vector<8xf32>
    %25 = vector.multi_reduction <maximumf>, %24, %cst_12 [1] : vector<8x8xf32> to vector<8xf32>
    %26 = vector.shape_cast %25 : vector<8xf32> to vector<8x1xf32>
    %27 = vector.broadcast %26 : vector<8x1xf32> to vector<8x8xf32>
    %28 = arith.subf %24, %27 : vector<8x8xf32>
    %29 = math.exp %28 : vector<8x8xf32>
    %cst_13 = arith.constant dense<0.000000e+00> : vector<8xf32>
    %30 = vector.multi_reduction <add>, %29, %cst_13 [1] : vector<8x8xf32> to vector<8xf32>
    %31 = vector.shape_cast %30 : vector<8xf32> to vector<8x1xf32>
    %32 = tpu.reciprocal %31 {approx = true} : vector<8x1xf32> -> vector<8x1xf32>
    %33 = vector.broadcast %32 : vector<8x1xf32> to vector<8x8xf32>
    %34 = arith.mulf %29, %33 : vector<8x8xf32>
    %cst_14 = arith.constant dense<0.000000e+00> : vector<8x8xf32>
    %35 = tpu.matmul %34, %19, %cst_14 {dimension_numbers = #tpu.dot_dimension_numbers<[1], [0], [0], [1], [0, 0, 1, 1], [], []>} : vector<8x8xf32>, vector<8x8xf32>, vector<8x8xf32> -> vector<8x8xf32>
    %c0_15 = arith.constant 0 : index
    %c0_16 = arith.constant 0 : index
    %36 = vector.load %arg25[%c0_15, %c0_16] : memref<16x32xf32, #tpu.memory_space<vmem>>, vector<8x8xf32>
    tpu.vector_store %arg25[%c0_15, %c0_16], %35 {strides = array<i32>} : memref<16x32xf32, #tpu.memory_space<vmem>>, vector<8x8xf32>,
    %37 = vector.extract_strided_slice %13 {offsets = [0, 8], sizes = [8, 8], strides = [1, 1]} : vector<16x32xf32> to vector<8x8xf32>
    %38 = vector.extract_strided_slice %14 {offsets = [0, 8], sizes = [8, 8], strides = [1, 1]} : vector<16x32xf32> to vector<8x8xf32>
    %39 = vector.extract_strided_slice %15 {offsets = [0, 8], sizes = [8, 8], strides = [1, 1]} : vector<16x32xf32> to vector<8x8xf32>
    %cst_17 = arith.constant dense<0.000000e+00> : vector<8x8xf32>
    %40 = tpu.matmul %37, %38, %cst_17 {dimension_numbers = #tpu.dot_dimension_numbers<[1], [1], [0], [0], [0, 0, 1, 0], [], []>} : vector<8x8xf32>, vector<8x8xf32>, vector<8x8xf32> -> vector<8x8xf32>
    %cst_18 = arith.constant 0.353553385 : f32
    %41 = vector.broadcast %cst_18 : f32 to vector<8x8xf32>
    %42 = arith.mulf %40, %41 : vector<8x8xf32>
    %43 = vector.broadcast %16 : vector<1x8xf32> to vector<8x8xf32>
    %44 = arith.addf %42, %43 : vector<8x8xf32>
    %cst_19 = arith.constant dense<0xFF800000> : vector<8xf32>
    %45 = vector.multi_reduction <maximumf>, %44, %cst_19 [1] : vector<8x8xf32> to vector<8xf32>
    %46 = vector.shape_cast %45 : vector<8xf32> to vector<8x1xf32>
    %47 = vector.broadcast %46 : vector<8x1xf32> to vector<8x8xf32>
    %48 = arith.subf %44, %47 : vector<8x8xf32>
    %49 = math.exp %48 : vector<8x8xf32>
    %cst_20 = arith.constant dense<0.000000e+00> : vector<8xf32>
    %50 = vector.multi_reduction <add>, %49, %cst_20 [1] : vector<8x8xf32> to vector<8xf32>
    %51 = vector.shape_cast %50 : vector<8xf32> to vector<8x1xf32>
    %52 = tpu.reciprocal %51 {approx = true} : vector<8x1xf32> -> vector<8x1xf32>
    %53 = vector.broadcast %52 : vector<8x1xf32> to vector<8x8xf32>
    %54 = arith.mulf %49, %53 : vector<8x8xf32>
    %cst_21 = arith.constant dense<0.000000e+00> : vector<8x8xf32>
    %55 = tpu.matmul %54, %39, %cst_21 {dimension_numbers = #tpu.dot_dimension_numbers<[1], [0], [0], [1], [0, 0, 1, 1], [], []>} : vector<8x8xf32>, vector<8x8xf32>, vector<8x8xf32> -> vector<8x8xf32>
    %c0_22 = arith.constant 0 : index
    %c8 = arith.constant 8 : index
    %56 = vector.load %arg25[%c0_22, %c8] : memref<16x32xf32, #tpu.memory_space<vmem>>, vector<8x8xf32>
    tpu.vector_store %arg25[%c0_22, %c8], %55 {strides = array<i32>} : memref<16x32xf32, #tpu.memory_space<vmem>>, vector<8x8xf32>,
    %57 = vector.extract_strided_slice %13 {offsets = [0, 16], sizes = [8, 8], strides = [1, 1]} : vector<16x32xf32> to vector<8x8xf32>
    %58 = vector.extract_strided_slice %14 {offsets = [0, 16], sizes = [8, 8], strides = [1, 1]} : vector<16x32xf32> to vector<8x8xf32>
    %59 = vector.extract_strided_slice %15 {offsets = [0, 16], sizes = [8, 8], strides = [1, 1]} : vector<16x32xf32> to vector<8x8xf32>
    %cst_23 = arith.constant dense<0.000000e+00> : vector<8x8xf32>
    %60 = tpu.matmul %57, %58, %cst_23 {dimension_numbers = #tpu.dot_dimension_numbers<[1], [1], [0], [0], [0, 0, 1, 0], [], []>} : vector<8x8xf32>, vector<8x8xf32>, vector<8x8xf32> -> vector<8x8xf32>
    %cst_24 = arith.constant 0.353553385 : f32
    %61 = vector.broadcast %cst_24 : f32 to vector<8x8xf32>
    %62 = arith.mulf %60, %61 : vector<8x8xf32>
    %63 = vector.broadcast %16 : vector<1x8xf32> to vector<8x8xf32>
    %64 = arith.addf %62, %63 : vector<8x8xf32>
    %cst_25 = arith.constant dense<0xFF800000> : vector<8xf32>
    %65 = vector.multi_reduction <maximumf>, %64, %cst_25 [1] : vector<8x8xf32> to vector<8xf32>
    %66 = vector.shape_cast %65 : vector<8xf32> to vector<8x1xf32>
    %67 = vector.broadcast %66 : vector<8x1xf32> to vector<8x8xf32>
    %68 = arith.subf %64, %67 : vector<8x8xf32>
    %69 = math.exp %68 : vector<8x8xf32>
    %cst_26 = arith.constant dense<0.000000e+00> : vector<8xf32>
    %70 = vector.multi_reduction <add>, %69, %cst_26 [1] : vector<8x8xf32> to vector<8xf32>
    %71 = vector.shape_cast %70 : vector<8xf32> to vector<8x1xf32>
    %72 = tpu.reciprocal %71 {approx = true} : vector<8x1xf32> -> vector<8x1xf32>
    %73 = vector.broadcast %72 : vector<8x1xf32> to vector<8x8xf32>
    %74 = arith.mulf %69, %73 : vector<8x8xf32>
    %cst_27 = arith.constant dense<0.000000e+00> : vector<8x8xf32>
    %75 = tpu.matmul %74, %59, %cst_27 {dimension_numbers = #tpu.dot_dimension_numbers<[1], [0], [0], [1], [0, 0, 1, 1], [], []>} : vector<8x8xf32>, vector<8x8xf32>, vector<8x8xf32> -> vector<8x8xf32>
    %c0_28 = arith.constant 0 : index
    %c16 = arith.constant 16 : index
    %76 = vector.load %arg25[%c0_28, %c16] : memref<16x32xf32, #tpu.memory_space<vmem>>, vector<8x8xf32>
    tpu.vector_store %arg25[%c0_28, %c16], %75 {strides = array<i32>} : memref<16x32xf32, #tpu.memory_space<vmem>>, vector<8x8xf32>,
    %77 = vector.extract_strided_slice %13 {offsets = [0, 24], sizes = [8, 8], strides = [1, 1]} : vector<16x32xf32> to vector<8x8xf32>
    %78 = vector.extract_strided_slice %14 {offsets = [0, 24], sizes = [8, 8], strides = [1, 1]} : vector<16x32xf32> to vector<8x8xf32>
    %79 = vector.extract_strided_slice %15 {offsets = [0, 24], sizes = [8, 8], strides = [1, 1]} : vector<16x32xf32> to vector<8x8xf32>
    %cst_29 = arith.constant dense<0.000000e+00> : vector<8x8xf32>
    %80 = tpu.matmul %77, %78, %cst_29 {dimension_numbers = #tpu.dot_dimension_numbers<[1], [1], [0], [0], [0, 0, 1, 0], [], []>} : vector<8x8xf32>, vector<8x8xf32>, vector<8x8xf32> -> vector<8x8xf32>
    %cst_30 = arith.constant 0.353553385 : f32
    %81 = vector.broadcast %cst_30 : f32 to vector<8x8xf32>
    %82 = arith.mulf %80, %81 : vector<8x8xf32>
    %83 = vector.broadcast %16 : vector<1x8xf32> to vector<8x8xf32>
    %84 = arith.addf %82, %83 : vector<8x8xf32>
    %cst_31 = arith.constant dense<0xFF800000> : vector<8xf32>
    %85 = vector.multi_reduction <maximumf>, %84, %cst_31 [1] : vector<8x8xf32> to vector<8xf32>
    %86 = vector.shape_cast %85 : vector<8xf32> to vector<8x1xf32>
    %87 = vector.broadcast %86 : vector<8x1xf32> to vector<8x8xf32>
    %88 = arith.subf %84, %87 : vector<8x8xf32>
    %89 = math.exp %88 : vector<8x8xf32>
    %cst_32 = arith.constant dense<0.000000e+00> : vector<8xf32>
    %90 = vector.multi_reduction <add>, %89, %cst_32 [1] : vector<8x8xf32> to vector<8xf32>
    %91 = vector.shape_cast %90 : vector<8xf32> to vector<8x1xf32>
    %92 = tpu.reciprocal %91 {approx = true} : vector<8x1xf32> -> vector<8x1xf32>
    %93 = vector.broadcast %92 : vector<8x1xf32> to vector<8x8xf32>
    %94 = arith.mulf %89, %93 : vector<8x8xf32>
    %cst_33 = arith.constant dense<0.000000e+00> : vector<8x8xf32>
    %95 = tpu.matmul %94, %79, %cst_33 {dimension_numbers = #tpu.dot_dimension_numbers<[1], [0], [0], [1], [0, 0, 1, 1], [], []>} : vector<8x8xf32>, vector<8x8xf32>, vector<8x8xf32> -> vector<8x8xf32>
    %c0_34 = arith.constant 0 : index
    %c24 = arith.constant 24 : index
    %96 = vector.load %arg25[%c0_34, %c24] : memref<16x32xf32, #tpu.memory_space<vmem>>, vector<8x8xf32>
    tpu.vector_store %arg25[%c0_34, %c24], %95 {strides = array<i32>} : memref<16x32xf32, #tpu.memory_space<vmem>>, vector<8x8xf32>,
    %97 = vector.extract_strided_slice %4 {offsets = [1, 0], sizes = [1, 8], strides = [1, 1]} : vector<2x8xf32> to vector<1x8xf32>
    %98 = vector.extract_strided_slice %13 {offsets = [8, 0], sizes = [8, 8], strides = [1, 1]} : vector<16x32xf32> to vector<8x8xf32>
    %99 = vector.extract_strided_slice %14 {offsets = [8, 0], sizes = [8, 8], strides = [1, 1]} : vector<16x32xf32> to vector<8x8xf32>
    %100 = vector.extract_strided_slice %15 {offsets = [8, 0], sizes = [8, 8], strides = [1, 1]} : vector<16x32xf32> to vector<8x8xf32>
    %cst_35 = arith.constant dense<0.000000e+00> : vector<8x8xf32>
    %101 = tpu.matmul %98, %99, %cst_35 {dimension_numbers = #tpu.dot_dimension_numbers<[1], [1], [0], [0], [0, 0, 1, 0], [], []>} : vector<8x8xf32>, vector<8x8xf32>, vector<8x8xf32> -> vector<8x8xf32>
    %cst_36 = arith.constant 0.353553385 : f32
    %102 = vector.broadcast %cst_36 : f32 to vector<8x8xf32>
    %103 = arith.mulf %101, %102 : vector<8x8xf32>
    %104 = vector.broadcast %97 : vector<1x8xf32> to vector<8x8xf32>
    %105 = arith.addf %103, %104 : vector<8x8xf32>
    %cst_37 = arith.constant dense<0xFF800000> : vector<8xf32>
    %106 = vector.multi_reduction <maximumf>, %105, %cst_37 [1] : vector<8x8xf32> to vector<8xf32>
    %107 = vector.shape_cast %106 : vector<8xf32> to vector<8x1xf32>
    %108 = vector.broadcast %107 : vector<8x1xf32> to vector<8x8xf32>
    %109 = arith.subf %105, %108 : vector<8x8xf32>
    %110 = math.exp %109 : vector<8x8xf32>
    %cst_38 = arith.constant dense<0.000000e+00> : vector<8xf32>
    %111 = vector.multi_reduction <add>, %110, %cst_38 [1] : vector<8x8xf32> to vector<8xf32>
    %112 = vector.shape_cast %111 : vector<8xf32> to vector<8x1xf32>
    %113 = tpu.reciprocal %112 {approx = true} : vector<8x1xf32> -> vector<8x1xf32>
    %114 = vector.broadcast %113 : vector<8x1xf32> to vector<8x8xf32>
    %115 = arith.mulf %110, %114 : vector<8x8xf32>
    %cst_39 = arith.constant dense<0.000000e+00> : vector<8x8xf32>
    %116 = tpu.matmul %115, %100, %cst_39 {dimension_numbers = #tpu.dot_dimension_numbers<[1], [0], [0], [1], [0, 0, 1, 1], [], []>} : vector<8x8xf32>, vector<8x8xf32>, vector<8x8xf32> -> vector<8x8xf32>
    %c8_40 = arith.constant 8 : index
    %c0_41 = arith.constant 0 : index
    %117 = vector.load %arg25[%c8_40, %c0_41] : memref<16x32xf32, #tpu.memory_space<vmem>>, vector<8x8xf32>
    tpu.vector_store %arg25[%c8_40, %c0_41], %116 {strides = array<i32>} : memref<16x32xf32, #tpu.memory_space<vmem>>, vector<8x8xf32>,
    %118 = vector.extract_strided_slice %13 {offsets = [8, 8], sizes = [8, 8], strides = [1, 1]} : vector<16x32xf32> to vector<8x8xf32>
    %119 = vector.extract_strided_slice %14 {offsets = [8, 8], sizes = [8, 8], strides = [1, 1]} : vector<16x32xf32> to vector<8x8xf32>
    %120 = vector.extract_strided_slice %15 {offsets = [8, 8], sizes = [8, 8], strides = [1, 1]} : vector<16x32xf32> to vector<8x8xf32>
    %cst_42 = arith.constant dense<0.000000e+00> : vector<8x8xf32>
    %121 = tpu.matmul %118, %119, %cst_42 {dimension_numbers = #tpu.dot_dimension_numbers<[1], [1], [0], [0], [0, 0, 1, 0], [], []>} : vector<8x8xf32>, vector<8x8xf32>, vector<8x8xf32> -> vector<8x8xf32>
    %cst_43 = arith.constant 0.353553385 : f32
    %122 = vector.broadcast %cst_43 : f32 to vector<8x8xf32>
    %123 = arith.mulf %121, %122 : vector<8x8xf32>
    %124 = vector.broadcast %97 : vector<1x8xf32> to vector<8x8xf32>
    %125 = arith.addf %123, %124 : vector<8x8xf32>
    %cst_44 = arith.constant dense<0xFF800000> : vector<8xf32>
    %126 = vector.multi_reduction <maximumf>, %125, %cst_44 [1] : vector<8x8xf32> to vector<8xf32>
    %127 = vector.shape_cast %126 : vector<8xf32> to vector<8x1xf32>
    %128 = vector.broadcast %127 : vector<8x1xf32> to vector<8x8xf32>
    %129 = arith.subf %125, %128 : vector<8x8xf32>
    %130 = math.exp %129 : vector<8x8xf32>
    %cst_45 = arith.constant dense<0.000000e+00> : vector<8xf32>
    %131 = vector.multi_reduction <add>, %130, %cst_45 [1] : vector<8x8xf32> to vector<8xf32>
    %132 = vector.shape_cast %131 : vector<8xf32> to vector<8x1xf32>
    %133 = tpu.reciprocal %132 {approx = true} : vector<8x1xf32> -> vector<8x1xf32>
    %134 = vector.broadcast %133 : vector<8x1xf32> to vector<8x8xf32>
    %135 = arith.mulf %130, %134 : vector<8x8xf32>
    %cst_46 = arith.constant dense<0.000000e+00> : vector<8x8xf32>
    %136 = tpu.matmul %135, %120, %cst_46 {dimension_numbers = #tpu.dot_dimension_numbers<[1], [0], [0], [1], [0, 0, 1, 1], [], []>} : vector<8x8xf32>, vector<8x8xf32>, vector<8x8xf32> -> vector<8x8xf32>
    %c8_47 = arith.constant 8 : index
    %c8_48 = arith.constant 8 : index
    %137 = vector.load %arg25[%c8_47, %c8_48] : memref<16x32xf32, #tpu.memory_space<vmem>>, vector<8x8xf32>
    tpu.vector_store %arg25[%c8_47, %c8_48], %136 {strides = array<i32>} : memref<16x32xf32, #tpu.memory_space<vmem>>, vector<8x8xf32>,
    %138 = vector.extract_strided_slice %13 {offsets = [8, 16], sizes = [8, 8], strides = [1, 1]} : vector<16x32xf32> to vector<8x8xf32>
    %139 = vector.extract_strided_slice %14 {offsets = [8, 16], sizes = [8, 8], strides = [1, 1]} : vector<16x32xf32> to vector<8x8xf32>
    %140 = vector.extract_strided_slice %15 {offsets = [8, 16], sizes = [8, 8], strides = [1, 1]} : vector<16x32xf32> to vector<8x8xf32>
    %cst_49 = arith.constant dense<0.000000e+00> : vector<8x8xf32>
    %141 = tpu.matmul %138, %139, %cst_49 {dimension_numbers = #tpu.dot_dimension_numbers<[1], [1], [0], [0], [0, 0, 1, 0], [], []>} : vector<8x8xf32>, vector<8x8xf32>, vector<8x8xf32> -> vector<8x8xf32>
    %cst_50 = arith.constant 0.353553385 : f32
    %142 = vector.broadcast %cst_50 : f32 to vector<8x8xf32>
    %143 = arith.mulf %141, %142 : vector<8x8xf32>
    %144 = vector.broadcast %97 : vector<1x8xf32> to vector<8x8xf32>
    %145 = arith.addf %143, %144 : vector<8x8xf32>
    %cst_51 = arith.constant dense<0xFF800000> : vector<8xf32>
    %146 = vector.multi_reduction <maximumf>, %145, %cst_51 [1] : vector<8x8xf32> to vector<8xf32>
    %147 = vector.shape_cast %146 : vector<8xf32> to vector<8x1xf32>
    %148 = vector.broadcast %147 : vector<8x1xf32> to vector<8x8xf32>
    %149 = arith.subf %145, %148 : vector<8x8xf32>
    %150 = math.exp %149 : vector<8x8xf32>
    %cst_52 = arith.constant dense<0.000000e+00> : vector<8xf32>
    %151 = vector.multi_reduction <add>, %150, %cst_52 [1] : vector<8x8xf32> to vector<8xf32>
    %152 = vector.shape_cast %151 : vector<8xf32> to vector<8x1xf32>
    %153 = tpu.reciprocal %152 {approx = true} : vector<8x1xf32> -> vector<8x1xf32>
    %154 = vector.broadcast %153 : vector<8x1xf32> to vector<8x8xf32>
    %155 = arith.mulf %150, %154 : vector<8x8xf32>
    %cst_53 = arith.constant dense<0.000000e+00> : vector<8x8xf32>
    %156 = tpu.matmul %155, %140, %cst_53 {dimension_numbers = #tpu.dot_dimension_numbers<[1], [0], [0], [1], [0, 0, 1, 1], [], []>} : vector<8x8xf32>, vector<8x8xf32>, vector<8x8xf32> -> vector<8x8xf32>
    %c8_54 = arith.constant 8 : index
    %c16_55 = arith.constant 16 : index
    %157 = vector.load %arg25[%c8_54, %c16_55] : memref<16x32xf32, #tpu.memory_space<vmem>>, vector<8x8xf32>
    tpu.vector_store %arg25[%c8_54, %c16_55], %156 {strides = array<i32>} : memref<16x32xf32, #tpu.memory_space<vmem>>, vector<8x8xf32>,
    %158 = vector.extract_strided_slice %13 {offsets = [8, 24], sizes = [8, 8], strides = [1, 1]} : vector<16x32xf32> to vector<8x8xf32>
    %159 = vector.extract_strided_slice %14 {offsets = [8, 24], sizes = [8, 8], strides = [1, 1]} : vector<16x32xf32> to vector<8x8xf32>
    %160 = vector.extract_strided_slice %15 {offsets = [8, 24], sizes = [8, 8], strides = [1, 1]} : vector<16x32xf32> to vector<8x8xf32>
    %cst_56 = arith.constant dense<0.000000e+00> : vector<8x8xf32>
    %161 = tpu.matmul %158, %159, %cst_56 {dimension_numbers = #tpu.dot_dimension_numbers<[1], [1], [0], [0], [0, 0, 1, 0], [], []>} : vector<8x8xf32>, vector<8x8xf32>, vector<8x8xf32> -> vector<8x8xf32>
    %cst_57 = arith.constant 0.353553385 : f32
    %162 = vector.broadcast %cst_57 : f32 to vector<8x8xf32>
    %163 = arith.mulf %161, %162 : vector<8x8xf32>
    %164 = vector.broadcast %97 : vector<1x8xf32> to vector<8x8xf32>
    %165 = arith.addf %163, %164 : vector<8x8xf32>
    %cst_58 = arith.constant dense<0xFF800000> : vector<8xf32>
    %166 = vector.multi_reduction <maximumf>, %165, %cst_58 [1] : vector<8x8xf32> to vector<8xf32>
    %167 = vector.shape_cast %166 : vector<8xf32> to vector<8x1xf32>
    %168 = vector.broadcast %167 : vector<8x1xf32> to vector<8x8xf32>
    %169 = arith.subf %165, %168 : vector<8x8xf32>
    %170 = math.exp %169 : vector<8x8xf32>
    %cst_59 = arith.constant dense<0.000000e+00> : vector<8xf32>
    %171 = vector.multi_reduction <add>, %170, %cst_59 [1] : vector<8x8xf32> to vector<8xf32>
    %172 = vector.shape_cast %171 : vector<8xf32> to vector<8x1xf32>
    %173 = tpu.reciprocal %172 {approx = true} : vector<8x1xf32> -> vector<8x1xf32>
    %174 = vector.broadcast %173 : vector<8x1xf32> to vector<8x8xf32>
    %175 = arith.mulf %170, %174 : vector<8x8xf32>
    %cst_60 = arith.constant dense<0.000000e+00> : vector<8x8xf32>
    %176 = tpu.matmul %175, %160, %cst_60 {dimension_numbers = #tpu.dot_dimension_numbers<[1], [0], [0], [1], [0, 0, 1, 1], [], []>} : vector<8x8xf32>, vector<8x8xf32>, vector<8x8xf32> -> vector<8x8xf32>
    %c8_61 = arith.constant 8 : index
    %c24_62 = arith.constant 24 : index
    %177 = vector.load %arg25[%c8_61, %c24_62] : memref<16x32xf32, #tpu.memory_space<vmem>>, vector<8x8xf32>
    tpu.vector_store %arg25[%c8_61, %c24_62], %176 {strides = array<i32>} : memref<16x32xf32, #tpu.memory_space<vmem>>, vector<8x8xf32>,
    %c0_63 = arith.constant 0 : index
    %c0_64 = arith.constant 0 : index
    %178 = vector.load %arg25[%c0_63, %c0_64] : memref<16x32xf32, #tpu.memory_space<vmem>>, vector<16x32xf32>
    %179 = arith.truncf %178 : vector<16x32xf32> to vector<16x32xbf16>
    %c0_65 = arith.constant 0 : index
    %c0_66 = arith.constant 0 : index
    %c0_67 = arith.constant 0 : index
    %180 = vector.load %arg7[%c0_65, %c0_66, %c0_67] : memref<1x32x32xbf16, #tpu.memory_space<vmem>>, vector<1x32x32xbf16>
    %181 = vector.shape_cast %180 : vector<1x32x32xbf16> to vector<32x32xbf16>
    %cst_68 = arith.constant dense<0.000000e+00> : vector<16x32xf32>
    %182 = tpu.matmul %179, %181, %cst_68 {dimension_numbers = #tpu.dot_dimension_numbers<[1], [0], [0], [1], [0, 0, 1, 1], [], []>} : vector<16x32xbf16>, vector<32x32xbf16>, vector<16x32xf32> -> vector<16x32xf32>
    %c0_69 = arith.constant 0 : index
    %c0_70 = arith.constant 0 : index
    %c0_71 = arith.constant 0 : index
    %183 = vector.load %arg8[%c0_69, %c0_70, %c0_71] : memref<1x1x32xf32, #tpu.memory_space<vmem>>, vector<1x1x32xf32>
    %184 = vector.shape_cast %183 : vector<1x1x32xf32> to vector<1x32xf32>
    %185 = vector.broadcast %184 : vector<1x32xf32> to vector<16x32xf32>
    %186 = arith.addf %182, %185 : vector<16x32xf32>
    %187 = arith.addf %186, %3 : vector<16x32xf32>
    %c0_72 = arith.constant 0 : index
    %c0_73 = arith.constant 0 : index
    %c0_74 = arith.constant 0 : index
    %188 = vector.load %arg9[%c0_72, %c0_73, %c0_74] : memref<1x1x32xf32, #tpu.memory_space<vmem>>, vector<1x1x32xf32>
    %189 = vector.shape_cast %188 : vector<1x1x32xf32> to vector<1x32xf32>
    %c0_75 = arith.constant 0 : index
    %c0_76 = arith.constant 0 : index
    %c0_77 = arith.constant 0 : index
    %190 = vector.load %arg10[%c0_75, %c0_76, %c0_77] : memref<1x1x32xf32, #tpu.memory_space<vmem>>, vector<1x1x32xf32>
    %191 = vector.shape_cast %190 : vector<1x1x32xf32> to vector<1x32xf32>
    %cst_78 = arith.constant dense<0.000000e+00> : vector<16xf32>
    %192 = vector.multi_reduction <add>, %187, %cst_78 [1] : vector<16x32xf32> to vector<16xf32>
    %193 = vector.shape_cast %192 : vector<16xf32> to vector<16x1xf32>
    %cst_79 = arith.constant 3.200000e+01 : f32
    %194 = vector.broadcast %cst_79 : f32 to vector<16x1xf32>
    %195 = arith.divf %193, %194 : vector<16x1xf32>
    %196 = vector.broadcast %195 : vector<16x1xf32> to vector<16x32xf32>
    %197 = arith.subf %187, %196 : vector<16x32xf32>
    %198 = vector.broadcast %195 : vector<16x1xf32> to vector<16x32xf32>
    %199 = arith.subf %187, %198 : vector<16x32xf32>
    %200 = arith.mulf %197, %199 : vector<16x32xf32>
    %cst_80 = arith.constant dense<0.000000e+00> : vector<16xf32>
    %201 = vector.multi_reduction <add>, %200, %cst_80 [1] : vector<16x32xf32> to vector<16xf32>
    %202 = vector.shape_cast %201 : vector<16xf32> to vector<16x1xf32>
    %cst_81 = arith.constant 3.200000e+01 : f32
    %203 = vector.broadcast %cst_81 : f32 to vector<16x1xf32>
    %204 = arith.divf %202, %203 : vector<16x1xf32>
    %205 = vector.broadcast %195 : vector<16x1xf32> to vector<16x32xf32>
    %206 = arith.subf %187, %205 : vector<16x32xf32>
    %cst_82 = arith.constant 9.99999974E-6 : f32
    %207 = vector.broadcast %cst_82 : f32 to vector<16x1xf32>
    %208 = arith.addf %204, %207 : vector<16x1xf32>
    %209 = math.rsqrt %208 : vector<16x1xf32>
    %210 = vector.broadcast %209 : vector<16x1xf32> to vector<16x32xf32>
    %211 = arith.mulf %206, %210 : vector<16x32xf32>
    %212 = vector.broadcast %189 : vector<1x32xf32> to vector<16x32xf32>
    %213 = arith.mulf %211, %212 : vector<16x32xf32>
    %214 = vector.broadcast %191 : vector<1x32xf32> to vector<16x32xf32>
    %215 = arith.addf %213, %214 : vector<16x32xf32>
    %216 = arith.truncf %215 : vector<16x32xf32> to vector<16x32xbf16>
    %c0_83 = arith.constant 0 : index
    %c0_84 = arith.constant 0 : index
    %c0_85 = arith.constant 0 : index
    %217 = vector.load %arg11[%c0_83, %c0_84, %c0_85] : memref<1x32x64xbf16, #tpu.memory_space<vmem>>, vector<1x32x64xbf16>
    %218 = vector.shape_cast %217 : vector<1x32x64xbf16> to vector<32x64xbf16>
    %cst_86 = arith.constant dense<0.000000e+00> : vector<16x64xf32>
    %219 = tpu.matmul %216, %218, %cst_86 {dimension_numbers = #tpu.dot_dimension_numbers<[1], [0], [0], [1], [0, 0, 1, 1], [], []>} : vector<16x32xbf16>, vector<32x64xbf16>, vector<16x64xf32> -> vector<16x64xf32>
    %c0_87 = arith.constant 0 : index
    %c0_88 = arith.constant 0 : index
    %c0_89 = arith.constant 0 : index
    %220 = vector.load %arg12[%c0_87, %c0_88, %c0_89] : memref<1x1x64xf32, #tpu.memory_space<vmem>>, vector<1x1x64xf32>
    %221 = vector.shape_cast %220 : vector<1x1x64xf32> to vector<1x64xf32>
    %222 = vector.broadcast %221 : vector<1x64xf32> to vector<16x64xf32>
    %223 = arith.addf %219, %222 : vector<16x64xf32>
    %cst_90 = arith.constant 5.000000e-01 : f32
    %224 = vector.broadcast %cst_90 : f32 to vector<16x64xf32>
    %225 = arith.mulf %224, %223 : vector<16x64xf32>
    %cst_91 = arith.constant 4.471500e-02 : f32
    %226 = vector.broadcast %cst_91 : f32 to vector<16x64xf32>
    %227 = arith.mulf %226, %223 : vector<16x64xf32>
    %228 = arith.mulf %227, %223 : vector<16x64xf32>
    %229 = arith.mulf %228, %223 : vector<16x64xf32>
    %230 = arith.addf %223, %229 : vector<16x64xf32>
    %cst_92 = arith.constant 0.797884583 : f32
    %231 = vector.broadcast %cst_92 : f32 to vector<16x64xf32>
    %232 = arith.mulf %231, %230 : vector<16x64xf32>
    %233 = math.tanh %232 : vector<16x64xf32>
    %cst_93 = arith.constant 1.000000e+00 : f32
    %234 = vector.broadcast %cst_93 : f32 to vector<16x64xf32>
    %235 = arith.addf %234, %233 : vector<16x64xf32>
    %236 = arith.mulf %225, %235 : vector<16x64xf32>
    %237 = arith.truncf %236 : vector<16x64xf32> to vector<16x64xbf16>
    %c0_94 = arith.constant 0 : index
    %c0_95 = arith.constant 0 : index
    %c0_96 = arith.constant 0 : index
    %238 = vector.load %arg13[%c0_94, %c0_95, %c0_96] : memref<1x64x32xbf16, #tpu.memory_space<vmem>>, vector<1x64x32xbf16>
    %239 = vector.shape_cast %238 : vector<1x64x32xbf16> to vector<64x32xbf16>
    %cst_97 = arith.constant dense<0.000000e+00> : vector<16x32xf32>
    %240 = tpu.matmul %237, %239, %cst_97 {dimension_numbers = #tpu.dot_dimension_numbers<[1], [0], [0], [1], [0, 0, 1, 1], [], []>} : vector<16x64xbf16>, vector<64x32xbf16>, vector<16x32xf32> -> vector<16x32xf32>
    %c0_98 = arith.constant 0 : index
    %c0_99 = arith.constant 0 : index
    %c0_100 = arith.constant 0 : index
    %241 = vector.load %arg14[%c0_98, %c0_99, %c0_100] : memref<1x1x32xf32, #tpu.memory_space<vmem>>, vector<1x1x32xf32>
    %242 = vector.shape_cast %241 : vector<1x1x32xf32> to vector<1x32xf32>
    %243 = vector.broadcast %242 : vector<1x32xf32> to vector<16x32xf32>
    %244 = arith.addf %240, %243 : vector<16x32xf32>
    %245 = arith.addf %244, %215 : vector<16x32xf32>
    %c0_101 = arith.constant 0 : index
    %c0_102 = arith.constant 0 : index
    %c0_103 = arith.constant 0 : index
    %246 = vector.load %arg15[%c0_101, %c0_102, %c0_103] : memref<1x1x32xf32, #tpu.memory_space<vmem>>, vector<1x1x32xf32>
    %247 = vector.shape_cast %246 : vector<1x1x32xf32> to vector<1x32xf32>
    %c0_104 = arith.constant 0 : index
    %c0_105 = arith.constant 0 : index
    %c0_106 = arith.constant 0 : index
    %248 = vector.load %arg16[%c0_104, %c0_105, %c0_106] : memref<1x1x32xf32, #tpu.memory_space<vmem>>, vector<1x1x32xf32>
    %249 = vector.shape_cast %248 : vector<1x1x32xf32> to vector<1x32xf32>
    %cst_107 = arith.constant dense<0.000000e+00> : vector<16xf32>
    %250 = vector.multi_reduction <add>, %245, %cst_107 [1] : vector<16x32xf32> to vector<16xf32>
    %251 = vector.shape_cast %250 : vector<16xf32> to vector<16x1xf32>
    %cst_108 = arith.constant 3.200000e+01 : f32
    %252 = vector.broadcast %cst_108 : f32 to vector<16x1xf32>
    %253 = arith.divf %251, %252 : vector<16x1xf32>
    %254 = vector.broadcast %253 : vector<16x1xf32> to vector<16x32xf32>
    %255 = arith.subf %245, %254 : vector<16x32xf32>
    %256 = vector.broadcast %253 : vector<16x1xf32> to vector<16x32xf32>
    %257 = arith.subf %245, %256 : vector<16x32xf32>
    %258 = arith.mulf %255, %257 : vector<16x32xf32>
    %cst_109 = arith.constant dense<0.000000e+00> : vector<16xf32>
    %259 = vector.multi_reduction <add>, %258, %cst_109 [1] : vector<16x32xf32> to vector<16xf32>
    %260 = vector.shape_cast %259 : vector<16xf32> to vector<16x1xf32>
    %cst_110 = arith.constant 3.200000e+01 : f32
    %261 = vector.broadcast %cst_110 : f32 to vector<16x1xf32>
    %262 = arith.divf %260, %261 : vector<16x1xf32>
    %263 = vector.broadcast %253 : vector<16x1xf32> to vector<16x32xf32>
    %264 = arith.subf %245, %263 : vector<16x32xf32>
    %cst_111 = arith.constant 9.99999974E-6 : f32
    %265 = vector.broadcast %cst_111 : f32 to vector<16x1xf32>
    %266 = arith.addf %262, %265 : vector<16x1xf32>
    %267 = math.rsqrt %266 : vector<16x1xf32>
    %268 = vector.broadcast %267 : vector<16x1xf32> to vector<16x32xf32>
    %269 = arith.mulf %264, %268 : vector<16x32xf32>
    %270 = vector.broadcast %247 : vector<1x32xf32> to vector<16x32xf32>
    %271 = arith.mulf %269, %270 : vector<16x32xf32>
    %272 = vector.broadcast %249 : vector<1x32xf32> to vector<16x32xf32>
    %273 = arith.addf %271, %272 : vector<16x32xf32>
    %c0_112 = arith.constant 0 : index
    %c0_113 = arith.constant 0 : index
    %274 = vector.load %arg24[%c0_112, %c0_113] : memref<16x32xf32, #tpu.memory_space<vmem>>, vector<16x32xf32>
    tpu.vector_store %arg24[%c0_112, %c0_113], %273 {strides = array<i32>} : memref<16x32xf32, #tpu.memory_space<vmem>>, vector<16x32xf32>,
    %c1_i32 = arith.constant 1 : i32
    %275 = arith.cmpi eq, %arg0, %c1_i32 : i32
    %276 = arith.extui %275 : i1 to i32
    %c0_i32_114 = arith.constant 0 : i32
    %277 = arith.cmpi ne, %276, %c0_i32_114 : i32
    scf.if %277 {
      %c0_115 = arith.constant 0 : index
      %c0_116 = arith.constant 0 : index
      %278 = tpu.strided_load %arg24[%c0_115, %c0_116] {strides = array<i32: 8, 1>} : memref<16x32xf32, #tpu.memory_space<vmem>>, vector<2x32xf32>
      %c0_117 = arith.constant 0 : index
      %c0_118 = arith.constant 0 : index
      %279 = vector.load %arg17[%c0_117, %c0_118] : memref<32x32xf32, #tpu.memory_space<vmem>>, vector<32x32xf32>
      %cst_119 = arith.constant dense<0.000000e+00> : vector<2x32xf32>
      %280 = tpu.matmul %278, %279, %cst_119 {dimension_numbers = #tpu.dot_dimension_numbers<[1], [0], [0], [1], [0, 0, 1, 1], [], []>} : vector<2x32xf32>, vector<32x32xf32>, vector<2x32xf32> -> vector<2x32xf32>
      %c0_120 = arith.constant 0 : index
      %c0_121 = arith.constant 0 : index
      %281 = vector.load %arg18[%c0_120, %c0_121] : memref<1x32xf32, #tpu.memory_space<vmem>>, vector<1x32xf32>
      %282 = vector.broadcast %281 : vector<1x32xf32> to vector<2x32xf32>
      %283 = arith.addf %280, %282 : vector<2x32xf32>
      %284 = math.tanh %283 : vector<2x32xf32>
      %c0_122 = arith.constant 0 : index
      %c0_123 = arith.constant 0 : index
      %285 = vector.load %arg19[%c0_122, %c0_123] : memref<32x2xf32, #tpu.memory_space<vmem>>, vector<32x2xf32>
      %cst_124 = arith.constant dense<0.000000e+00> : vector<2x2xf32>
      %286 = tpu.matmul %284, %285, %cst_124 {dimension_numbers = #tpu.dot_dimension_numbers<[1], [0], [0], [1], [0, 0, 1, 1], [], []>} : vector<2x32xf32>, vector<32x2xf32>, vector<2x2xf32> -> vector<2x2xf32>
      %c0_125 = arith.constant 0 : index
      %c0_126 = arith.constant 0 : index
      %287 = vector.load %arg20[%c0_125, %c0_126] : memref<1x2xf32, #tpu.memory_space<vmem>>, vector<1x2xf32>
      %288 = vector.broadcast %287 : vector<1x2xf32> to vector<2x2xf32>
      %289 = arith.addf %286, %288 : vector<2x2xf32>
      %c0_127 = arith.constant 0 : index
      %c0_128 = arith.constant 0 : index
      %290 = vector.load %arg22[%c0_127, %c0_128] : memref<2x2xf32, #tpu.memory_space<vmem>>, vector<2x2xf32>
      tpu.vector_store %arg22[%c0_127, %c0_128], %289 {strides = array<i32>} : memref<2x2xf32, #tpu.memory_space<vmem>>, vector<2x2xf32>,
      %c0_129 = arith.constant 0 : index
      %c0_130 = arith.constant 0 : index
      %291 = vector.load %arg21[%c0_129, %c0_130] : memref<2x1xi32, #tpu.memory_space<vmem>>, vector<2x1xi32>
      %292 = tpu.iota {dimensions = array<i32: 1>} : vector<2x2xi32>
      %293 = vector.broadcast %291 : vector<2x1xi32> to vector<2x2xi32>
      %294 = arith.cmpi eq, %292, %293 : vector<2x2xi32>
      %295 = arith.extui %294 : vector<2x2xi1> to vector<2x2xi32>
      %296 = arith.sitofp %295 : vector<2x2xi32> to vector<2x2xf32>
      %cst_131 = arith.constant dense<0xFF800000> : vector<2xf32>
      %297 = vector.multi_reduction <maximumf>, %289, %cst_131 [1] : vector<2x2xf32> to vector<2xf32>
      %298 = vector.shape_cast %297 : vector<2xf32> to vector<2x1xf32>
      %299 = vector.broadcast %298 : vector<2x1xf32> to vector<2x2xf32>
      %300 = arith.subf %289, %299 : vector<2x2xf32>
      %301 = math.exp %300 : vector<2x2xf32>
      %cst_132 = arith.constant dense<0.000000e+00> : vector<2xf32>
      %302 = vector.multi_reduction <add>, %301, %cst_132 [1] : vector<2x2xf32> to vector<2xf32>
      %303 = vector.shape_cast %302 : vector<2xf32> to vector<2x1xf32>
      %304 = math.log %303 : vector<2x1xf32>
      %305 = arith.addf %298, %304 : vector<2x1xf32>
      %306 = arith.mulf %296, %289 : vector<2x2xf32>
      %cst_133 = arith.constant dense<0.000000e+00> : vector<2xf32>
      %307 = vector.multi_reduction <add>, %306, %cst_133 [1] : vector<2x2xf32> to vector<2xf32>
      %308 = vector.shape_cast %307 : vector<2xf32> to vector<2x1xf32>
      %309 = arith.subf %305, %308 : vector<2x1xf32>
      %310 = vector.shape_cast %309 : vector<2x1xf32> to vector<1x2x1xf32>
      %cst_134 = arith.constant dense<0.000000e+00> : vector<1xf32>
      %311 = vector.multi_reduction <add>, %310, %cst_134 [1, 2] : vector<1x2x1xf32> to vector<1xf32>
      %312 = vector.shape_cast %311 : vector<1xf32> to vector<1x1x1xf32>
      %313 = vector.extract %312[0, 0, 0] : f32 from vector<1x1x1xf32>
      %cst_135 = arith.constant 2.000000e+00 : f32
      %314 = arith.divf %313, %cst_135 : f32
      %315 = vector.broadcast %314 : f32 to vector<1x1xf32>
      %c0_136 = arith.constant 0 : index
      %c0_137 = arith.constant 0 : index
      %316 = vector.load %arg23[%c0_136, %c0_137] : memref<1x1xf32, #tpu.memory_space<vmem>>, vector<1x1xf32>
      tpu.vector_store %arg23[%c0_136, %c0_137], %315 {strides = array<i32>} : memref<1x1xf32, #tpu.memory_space<vmem>>, vector<1x1xf32>,
    } else {
    }
    return
  }
  func.func @transform_1(%arg0: i32) -> (i32, i32) {
    %c0_i32 = arith.constant 0 : i32
    %c0_i32_0 = arith.constant 0 : i32
    %c0_i32_1 = arith.constant 0 : i32
    return %c0_i32, %c0_i32_0 : i32, i32
  }
  func.func @transform_2(%arg0: i32) -> (i32, i32) {
    %c0_i32 = arith.constant 0 : i32
    %c0_i32_0 = arith.constant 0 : i32
    %c0_i32_1 = arith.constant 0 : i32
    return %c0_i32, %c0_i32_0 : i32, i32
  }
  func.func @transform_3(%arg0: i32) -> (i32, i32) {
    %c0_i32 = arith.constant 0 : i32
    %c0_i32_0 = arith.constant 0 : i32
    %c0_i32_1 = arith.constant 0 : i32
    return %c0_i32, %c0_i32_0 : i32, i32
  }
  func.func @transform_4(%arg0: i32) -> (i32, i32, i32) {
    %c0_i32 = arith.constant 0 : i32
    %c0_i32_0 = arith.constant 0 : i32
    %c0_i32_1 = arith.constant 0 : i32
    return %arg0, %c0_i32, %c0_i32_0 : i32, i32, i32
  }
  func.func @transform_5(%arg0: i32) -> (i32, i32, i32) {
    %c0_i32 = arith.constant 0 : i32
    %c0_i32_0 = arith.constant 0 : i32
    %c0_i32_1 = arith.constant 0 : i32
    return %arg0, %c0_i32, %c0_i32_0 : i32, i32, i32
  }
  func.func @transform_6(%arg0: i32) -> (i32, i32, i32) {
    %c0_i32 = arith.constant 0 : i32
    %c0_i32_0 = arith.constant 0 : i32
    %c0_i32_1 = arith.constant 0 : i32
    return %arg0, %c0_i32, %c0_i32_0 : i32, i32, i32
  }
  func.func @transform_7(%arg0: i32) -> (i32, i32, i32) {
    %c0_i32 = arith.constant 0 : i32
    %c0_i32_0 = arith.constant 0 : i32
    %c0_i32_1 = arith.constant 0 : i32
    return %arg0, %c0_i32, %c0_i32_0 : i32, i32, i32
  }
  func.func @transform_8(%arg0: i32) -> (i32, i32, i32) {
    %c0_i32 = arith.constant 0 : i32
    %c0_i32_0 = arith.constant 0 : i32
    %c0_i32_1 = arith.constant 0 : i32
    return %arg0, %c0_i32, %c0_i32_0 : i32, i32, i32
  }
  func.func @transform_9(%arg0: i32) -> (i32, i32, i32) {
    %c0_i32 = arith.constant 0 : i32
    %c0_i32_0 = arith.constant 0 : i32
    %c0_i32_1 = arith.constant 0 : i32
    return %arg0, %c0_i32, %c0_i32_0 : i32, i32, i32
  }
  func.func @transform_10(%arg0: i32) -> (i32, i32, i32) {
    %c0_i32 = arith.constant 0 : i32
    %c0_i32_0 = arith.constant 0 : i32
    %c0_i32_1 = arith.constant 0 : i32
    return %arg0, %c0_i32, %c0_i32_0 : i32, i32, i32
  }
  func.func @transform_11(%arg0: i32) -> (i32, i32, i32) {
    %c0_i32 = arith.constant 0 : i32
    %c0_i32_0 = arith.constant 0 : i32
    %c0_i32_1 = arith.constant 0 : i32
    return %arg0, %c0_i32, %c0_i32_0 : i32, i32, i32
  }
  func.func @transform_12(%arg0: i32) -> (i32, i32, i32) {
    %c0_i32 = arith.constant 0 : i32
    %c0_i32_0 = arith.constant 0 : i32
    %c0_i32_1 = arith.constant 0 : i32
    return %arg0, %c0_i32, %c0_i32_0 : i32, i32, i32
  }
  func.func @transform_13(%arg0: i32) -> (i32, i32, i32) {
    %c0_i32 = arith.constant 0 : i32
    %c0_i32_0 = arith.constant 0 : i32
    %c0_i32_1 = arith.constant 0 : i32
    return %arg0, %c0_i32, %c0_i32_0 : i32, i32, i32
  }
  func.func @transform_14(%arg0: i32) -> (i32, i32, i32) {
    %c0_i32 = arith.constant 0 : i32
    %c0_i32_0 = arith.constant 0 : i32
    %c0_i32_1 = arith.constant 0 : i32
    return %arg0, %c0_i32, %c0_i32_0 : i32, i32, i32
  }
  func.func @transform_15(%arg0: i32) -> (i32, i32, i32) {
    %c0_i32 = arith.constant 0 : i32
    %c0_i32_0 = arith.constant 0 : i32
    %c0_i32_1 = arith.constant 0 : i32
    return %arg0, %c0_i32, %c0_i32_0 : i32, i32, i32
  }
  func.func @transform_16(%arg0: i32) -> (i32, i32) {
    %c0_i32 = arith.constant 0 : i32
    %c0_i32_0 = arith.constant 0 : i32
    %c0_i32_1 = arith.constant 0 : i32
    return %c0_i32, %c0_i32_0 : i32, i32
  }
  func.func @transform_17(%arg0: i32) -> (i32, i32) {
    %c0_i32 = arith.constant 0 : i32
    %c0_i32_0 = arith.constant 0 : i32
    %c0_i32_1 = arith.constant 0 : i32
    return %c0_i32, %c0_i32_0 : i32, i32
  }
  func.func @transform_18(%arg0: i32) -> (i32, i32) {
    %c0_i32 = arith.constant 0 : i32
    %c0_i32_0 = arith.constant 0 : i32
    %c0_i32_1 = arith.constant 0 : i32
    return %c0_i32, %c0_i32_0 : i32, i32
  }
  func.func @transform_19(%arg0: i32) -> (i32, i32) {
    %c0_i32 = arith.constant 0 : i32
    %c0_i32_0 = arith.constant 0 : i32
    %c0_i32_1 = arith.constant 0 : i32
    return %c0_i32, %c0_i32_0 : i32, i32
  }
  func.func @transform_20(%arg0: i32) -> (i32, i32) {
    %c0_i32 = arith.constant 0 : i32
    %c0_i32_0 = arith.constant 0 : i32
    %c0_i32_1 = arith.constant 0 : i32
    return %c0_i32, %c0_i32_0 : i32, i32
  }
  func.func @transform_21(%arg0: i32) -> (i32, i32) {
    %c0_i32 = arith.constant 0 : i32
    %c0_i32_0 = arith.constant 0 : i32
    %c0_i32_1 = arith.constant 0 : i32
    return %c0_i32, %c0_i32_0 : i32, i32
  }
  func.func @transform_22(%arg0: i32) -> (i32, i32) {
    %c0_i32 = arith.constant 0 : i32
    %c0_i32_0 = arith.constant 0 : i32
    %c0_i32_1 = arith.constant 0 : i32
    return %c0_i32, %c0_i32_0 : i32, i32
  }
}

</mosaic_0001>

<bundles_post_ra>
// kernel: tpu_custom_call.1
= control target key start
LH: loop header
LB: loop body
LE: loop exit
PB: predicated region body
PF: predicated region fallthrough
CT: control target
= control target key end

     0   :  { %s3407_s0 = inlined_call_operand.hbm [shape: f32[16,32], index: 0, kind: input, shape index: {}]   ;;  %s3408_s1 = inlined_call_operand.vmem [shape: f32[2,8], index: 1, kind: input, shape index: {}]   ;;  %s3409_s2 = inlined_call_operand.hbm [shape: f32[1,32], index: 2, kind: input, shape index: {}]   ;;  %s3410_s3 = inlined_call_operand.hbm [shape: f32[1,32], index: 3, kind: input, shape index: {}]   ;;  %s3411_s4 = inlined_call_operand.vmem [shape: bf16[2,32,96], index: 4, kind: input, shape index: {}]   ;;  %s3412_s5 = inlined_call_operand.vmem [shape: f32[2,1,96], index: 5, kind: input, shape index: {}]   ;;  %s3413_s6 = inlined_call_operand.vmem [shape: bf16[2,32,32], index: 6, kind: input, shape index: {}]   ;;  %s3414_s7 = inlined_call_operand.vmem [shape: f32[2,1,32], index: 7, kind: input, shape index: {}]   ;;  %s3415_s8 = inlined_call_operand.vmem [shape: f32[2,1,32], index: 8, kind: input, shape index: {}]   ;;  %s3416_s9 = inlined_call_operand.vmem [shape: f32[2,1,32], index: 9, kind: input, shape index: {}]   ;;  %s3417_s10 = inlined_call_operand.vmem [shape: bf16[2,32,64], index: 10, kind: input, shape index: {}]   ;;  %s3418_s11 = inlined_call_operand.vmem [shape: f32[2,1,64], index: 11, kind: input, shape index: {}]   ;;  %s3419_s12 = inlined_call_operand.vmem [shape: bf16[2,64,32], index: 12, kind: input, shape index: {}]   ;;  %s3420_s13 = inlined_call_operand.vmem [shape: f32[2,1,32], index: 13, kind: input, shape index: {}]   ;;  %s3421_s14 = inlined_call_operand.hbm [shape: f32[2,1,32], index: 14, kind: input, shape index: {}]   ;;  %s3422_s15 = inlined_call_operand.hbm [shape: f32[2,1,32], index: 15, kind: input, shape index: {}]   ;;  %s3423_s16 = inlined_call_operand.hbm [shape: f32[32,32], index: 16, kind: input, shape index: {}]   ;;  %s3424_s17 = inlined_call_operand.vmem [shape: f32[1,32], index: 17, kind: input, shape index: {}]   ;;  %s3425_s18 = inlined_call_operand.vmem [shape: f32[32,2], index: 18, kind: input, shape index: {}]   ;;  %s3426_s19 = inlined_call_operand.vmem [shape: f32[1,2], index: 19, kind: input, shape index: {}]   ;;  %s3427_s20 = inlined_call_operand.vmem [shape: s32[2,1], index: 20, kind: input, shape index: {}]   ;;  %s3428_s21 = inlined_call_operand.hbm [shape: f32[2,2], index: 21, kind: output, shape index: {0}]   ;;  %s3429_s22 = inlined_call_operand.hbm [shape: f32[1,1], index: 22, kind: output, shape index: {1}]  }
   0x1   :  { %3434 = sst [smem:[#allocation29_spill]] %s3407_s0 }
   0x2   :  { %3435 = sst [smem:[#allocation30_spill]] %s3408_s1 }
   0x3   :  { %3436 = sst [smem:[#allocation31_spill]] %s3409_s2 }
   0x4   :  { %3437 = sst [smem:[#allocation32_spill]] %s3410_s3 }
   0x5   :  { %3438 = sst [smem:[#allocation33_spill]] %s3411_s4 }
   0x6   :  { %3439 = sst [smem:[#allocation34_spill]] %s3412_s5 }
   0x7   :  { %3440 = sst [smem:[#allocation35_spill]] %s3413_s6 }
   0x8   :  { %3441 = sst [smem:[#allocation36_spill]] %s3420_s13 }
   0x9   :  { %3442 = sst [smem:[#allocation37_spill]] %s3421_s14 }
   0xa   :  { %3443 = sst [smem:[#allocation38_spill]] %s3422_s15 }
   0xb   :  { %3444 = sst [smem:[#allocation39_spill]] %s3423_s16 }
   0xc   :  { %3445 = sst [smem:[#allocation40_spill]] %s3424_s17 }
   0xd   :  { %3446 = sst [smem:[#allocation41_spill]] %s3425_s18 }
   0xe   :  { %3447 = sst [smem:[#allocation42_spill]] %s3426_s19 }
   0xf   :  { %3448 = sst [smem:[#allocation43_spill]] %s3427_s20 }
  0x10   :  { %3449 = sst [smem:[#allocation44_spill]] %s3428_s21 }
  0x11   :  { %3450 = sst [smem:[#allocation45_spill]] %s3429_s22 }
  0x12   :  { %28 = vsyncpa [#allocation6], 0 }
  0x13   :  { %29 = vsyncpa [#allocation9], 0 }
  0x14   :  { %30 = vsyncpa [#allocation7], 0 }
  0x15   :  { %31 = vsyncpa [#allocation15], 0  ;;  %s2956_s3 = smov 0   ;;  %s2958_s28 = smov 0  }
  0x16   :  { %s2960_s29 = smov 0   ;;  %s2962_s30 = smov 0  }
  0x17 LB: > { %s2975_s4 = sadd.s32 4294967295, %s2812_s30   ;;  %p380_p0 = scmp.ne.s32.totalorder %s2804_s28, %s2800_s3  ;;  %s2812_s30 = sphi %s2962_s30, %s3480_s30   ;;  %s2808_s29 = sphi %s2960_s29, %s3484_s29   ;;  %s2804_s28 = sphi %s2958_s28, %s3483_s28   ;;  %s2800_s3 = sphi %s2956_s3, %s3482_s3  }
  0x18   : > { %p381_p1 = scmp.eq.s32.totalorder %s2975_s4, 0  ;;  %p2227_p2 = scmp.ge.s32.totalorder %s2812_s30, 1 }
  0x19   : > { %p564_p3 = scmp.lt.s32.totalorder %s2812_s30, 3  ;;  %p2228_p4 = scmp.ne.s32.totalorder %s2975_s4, 0 }
  0x1a   : > { %p2984_p5 = por %p381_p1, %p380_p0  ;;  %s3452_s5 = sld [smem:[#allocation31_spill]] }
  0x1b   : > { %p2991_p6 = pnand %p2227_p2, %p564_p3  ;;  %s2814_s25 = smov [#allocation5]  }
  0x1c   : > { %s581_s26 = sshll.u32 %s2814_s25, 4  ;;  %s3454_s3 = sld [smem:[#allocation32_spill]]  ;;  %s582_s26 = int_to_ptr.vmem [resolvable:$true] %s581_s26 }
  0x1d   : > { %p2366_p7 = pneg %p2991_p6  ;;  %s3011_s2 = sadd.s32 1, %s2812_s30  }
  0x1e   : > { %3456 = sst [smem:[#allocation27_spill]] %s3011_s2  ;;  %s367_s27 = sadd.s32 1, %s2808_s29 }
  0x1f   : > { %p3002_p8 = pnand %p2366_p7, %p381_p1  ;;  %p374_p9 = scmp.ne.s32.totalorder %s2808_s29, %s2804_s28 }
  0x20   : > { %s579_s24 = sshll.u32 %s3452_s5, 4  ;;  %s2815_s5 = smov [#allocation8]   ;;  %s580_s24 = int_to_ptr.hbm [resolvable:$true] %s579_s24 }
  0x21   : > { %s593_s25 = sshll.u32 %s2815_s5, 4  ;;  %p375_p11 = scmp.eq.s32.totalorder %s2812_s30, 0  ;;  %s594_s25 = int_to_ptr.vmem [resolvable:$true] %s593_s25 }
  0x22   : > { %s591_s23 = sshll.u32 %s3454_s3, 4  ;;  %s364_s3 = ssub.s32 %s2812_s30, %s3011_s2  ;;  %s592_s23 = int_to_ptr.hbm [resolvable:$true] %s591_s23 }
  0x23   : > { %2369 = dma.hbm_to_vmem [thread:$0]  (!%p3002_p8), %s580_s24, 16, %s582_s26, [#allocation6]  }
  0x24   : > { %2372 = dma.hbm_to_vmem [thread:$0]  (!%p3002_p8), %s592_s23, 16, %s594_s25, [#allocation9]  }
  0x25   : > { %p365_p10 = scmp.eq.s32.totalorder %s364_s3, 0  ;;  %p2386_p12 = scmp.lt.s32.totalorder %s2812_s30, 2 }
  0x26   : > { %s698_s22 = sand.u32 1, %s2812_s30   ;;  %p376_p13 = por %p375_p11, %p374_p9 }
  0x27   : > { %s3022_s21 = scalar_select %p365_p10, %s2808_s29, %s367_s27  }
  0x28   : > { %s3432_s5 = sand.u32 1, %s2808_s29   ;;  %s3458_s14 = sld [smem:[#allocation37_spill]] }
  0x29   : > { %3457 = sst [smem:[#allocation28_spill]] %s3022_s21  ;;  %s701_s23 = scalar_lea.vmem [#allocation10], %s3432_s5 }
  0x2a   : > { %s708_s25 = sshll.u32 %s701_s23, 4  ;;  %p3031_p0 = pnand %p2386_p12, %p376_p13  ;;  %s709_s25 = int_to_ptr.vmem [resolvable:$true] %s708_s25 }
  0x2b   : > { %s3460_s16 = sld [smem:[#allocation39_spill]]  ;;  %s3038_s21 = scalar_lea.sflag [#allocation6], %s698_s22 }
  0x2c   : > { %p2590_p3 = pneg %p3031_p0 }
  0x2e   : > { %s704_s26 = scalar_lea.hbm %s3458_s14, %s2812_s30  ;;  %s2593_s17 = scalar_lea.hbm %s3458_s14, 2 }
  0x2f   : > { %s706_s19 = sshll.u32 %s704_s26, 4  ;;  %s707_s19 = int_to_ptr.hbm [resolvable:$true] %s706_s19 }
  0x30   : > { %s2586_s20 = sshra.s32 %s707_s19, 4  ;;  %s2587_s20 = int_to_ptr.hbm [resolvable:$true] %s2586_s20 }
  0x31   : > { %s602_s27 = sshll.u32 %s3460_s16, 4  ;;  %s2588_s24 = scalar_lea.hbm %s2587_s20, 1  ;;  %s603_s27 = int_to_ptr.hbm [resolvable:$true] %s602_s27 }
  0x32   : > { %p2589_p2 = scmp.ne.s32.totalorder %s2587_s20, %s2588_s24  ;;  %p2594_p10 = scmp.lt.s32.totalorder %s2587_s20, %s3458_s14 }
  0x33   : > { %p2595_p11 = scmp.lt.s32.totalorder %s2593_s17, %s2588_s24 }
  0x34   : > { %p2591_p7 = pnand %p2590_p3, %p2589_p2 }
  0x35   : > { %p2596_p12 = por %p2595_p11, %p2594_p10 }
  0x36   : > { %p2592_p9 = pneg %p2591_p7 }
  0x38   : > { %p2597_p13 = pnand %p2596_p12, %p2592_p9 }
  0x3a   : > { %2600 = shalt.err (!%p2597_p13)
}
  0x3b   : > { %2379 = dma.hbm_to_vmem [thread:$0]  (!%p3031_p0), %s707_s19, 16, %s709_s25, %s3038_s21  }
  0x3c   : > { %s2816_s22 = smov [#allocation12]   ;;  %s2817_s26 = smov 128  }
  0x3d   : > { %s604_s16 = sshll.u32 %s2816_s22, 4  ;;  %s2818_s23 = smov 8   ;;  %s605_s16 = int_to_ptr.vmem [resolvable:$true] %s604_s16 }
  0x3e   : > { %2375 = dma.hbm_to_vmem [thread:$0]  (!%p3002_p8), %s603_s27, 512, %s605_s16, [#allocation9], %s2817_s26, %s2817_s26, %s2818_s23  }
  0x3f   : > { %s3461_s15 = sld [smem:[#allocation38_spill]]  ;;  %s3462_s3 = sand.u32 1, %s2808_s29  }
  0x40   : > { %s718_s14 = scalar_lea.vmem [#allocation11], %s3462_s3 }
  0x41   : > { %s725_s18 = sshll.u32 %s718_s14, 4  ;;  %s726_s18 = int_to_ptr.vmem [resolvable:$true] %s725_s18 }
  0x45   : > { %s721_s24 = scalar_lea.hbm %s3461_s15, %s2812_s30  ;;  %s2653_s25 = scalar_lea.hbm %s3461_s15, 2 }
  0x46   : > { %s723_s17 = sshll.u32 %s721_s24, 4  ;;  %s724_s17 = int_to_ptr.hbm [resolvable:$true] %s723_s17 }
  0x47   : > { %s2646_s13 = sshra.s32 %s724_s17, 4  ;;  %s2647_s13 = int_to_ptr.hbm [resolvable:$true] %s2646_s13 }
  0x48   : > { %s2648_s19 = scalar_lea.hbm %s2647_s13, 1  ;;  %p2654_p8 = scmp.lt.s32.totalorder %s2647_s13, %s3461_s15 }
  0x49   : > { %p2649_p2 = scmp.ne.s32.totalorder %s2647_s13, %s2648_s19  ;;  %p2655_p10 = scmp.lt.s32.totalorder %s2653_s25, %s2648_s19 }
  0x4b   : > { %p2651_p7 = pnand %p2649_p2, %p2590_p3  ;;  %p2656_p11 = por %p2655_p10, %p2654_p8 }
  0x4d   : > { %p2652_p9 = pneg %p2651_p7 }
  0x4f   : > { %p2657_p12 = pnand %p2656_p11, %p2652_p9 }
  0x51   : > { %2660 = shalt.err (!%p2657_p12)
}
  0x52   : > { %2382 = dma.hbm_to_vmem [thread:$0]  (!%p3031_p0), %s724_s17, 16, %s726_s18, %s3038_s21  }
  0x53   : > { %734 = sbr.rel (%p2991_p6) target bundleno = 4041 (0xfc9), region = 100 }
  0x58   : > { %2773 = dma.done.wait (%p381_p1), [#allocation6], 16  }
  0x59   : > { %2775 = vsyncadd (%p381_p1), [#allocation6], 4294967280 }
  0x5a   : > { %2777 = dma.done.wait (%p381_p1), [#allocation9], 16  }
  0x5b   : > { %2779 = vsyncadd (%p381_p1), [#allocation9], 4294967280  ;;  %s746_s13 = sand.u32 1, %s2975_s4   ;;  %s748_s14 = sand.u32 1, %s2804_s28  }
  0x5c   : > { %s747_s18 = scalar_lea.sflag [#allocation6], %s746_s13  ;;  %s3086_s21 = scalar_lea.vmem [#allocation10], %s748_s14 }
  0x5d   : > { %2781 = dma.done.wait (%p2984_p5), %s747_s18, 32  }
  0x5e   : > { %2783 = vsyncadd (%p2984_p5), %s747_s18, 4294967264  ;;  %s3092_s6 = scalar_lea.vmem [#allocation11], %s748_s14 }
  0x5f   : > { %2785 = dma.done.wait (%p381_p1), [#allocation9], 512  }
  0x60   : > { %2787 = vsyncadd (%p381_p1), [#allocation9], 4294966784  ;;  %p859_p6 = scmp.lt.s32.totalorder %s2975_s4, 1  ;;  %s3464_s17 = sld [smem:[#allocation33_spill]] }
  0x61   : > { %s3465_s16 = sld [smem:[#allocation35_spill]]  ;;  %s2819_s19 = smov (!%p2228_p4), [#allocation2]  }
  0x62   : > { %s3100_s2 = scalar_select %p859_p6, %s2975_s4, 1 }
  0x63   : > { %s3466_s15 = sld [smem:[#allocation36_spill]]  ;;  %s911_s1 = sshll.u32 (!%p2228_p4), %s2819_s19, 4  ;;  %s912_s1 = int_to_ptr.vmem [resolvable:$true] %s911_s1 }
  0x64   : > { %s2324_s0 = sshll.u32 %s3100_s2, 4  ;;  %s880_s23 = scalar_lea.vmem %s3416_s9, %s3100_s2 }
  0x65   : > { %s2327_s5 = sshll.u32 %s3100_s2, 5  ;;  %901 = sbr.rel (%p2228_p4) target bundleno = 391 (0x187), region = 124 }
  0x66   : > { %s3110_s3 = scalar_lea.vmem %s3464_s17, %s2324_s0  ;;  %s3132_s17 = scalar_lea.vmem %s3417_s10, %s2324_s0 }
  0x67   : > { %s3115_s25 = scalar_lea.vmem %s3465_s16, %s2324_s0  ;;  %s888_s16 = scalar_lea.vmem %s3418_s11, %s3100_s2 }
  0x68   : > { %s3142_s13 = scalar_lea.vmem %s3419_s12, %s2327_s5  ;;  %s3467_s20 = sld [smem:[#allocation29_spill]] (!%p2228_p4) }
  0x69   : > { %s896_s22 = scalar_lea.vmem %s3466_s15, %s3100_s2 }
  0x6e   : > { %s909_s24 = sshll.u32 %s3467_s20, 4  ;;  %s910_s24 = int_to_ptr.hbm [resolvable:$true] %s909_s24 }
  0x6f   : > { %914 = dma.hbm_to_vmem [thread:$0]  %s910_s24, 256, %s912_s1, [#allocation4] }
  0x70   : > { %2788 = dma.done.wait [#allocation4], 256 }
  0x71   : > { %2789 = vsyncadd [#allocation4], 4294967040  ;;  %vm922_vm0 = vcmask 261120   ;;  %v918_v0 = vld [vmem:[#allocation2] sm:$0xff]  ;;  %v919_v2 = vld [vmem:[#allocation2 + $0x8] sm:$0xff]  ;;  %v2820_v4 = vmov 32.0  }
  0x72   : > { %v923_v1 = vsel %vm922_vm0, %v918_v0, 0.0  ;;  %v926_v3 = vsel %vm922_vm0, %v919_v2, 0.0  ;;  %2455 = vrcp.f32 %v2820_v4  ;;  %v2453_v35 = vld [vmem:[#allocation5] ss:$0 sm:$0xff]  ;;  %v2454_v38 = vld [vmem:[#allocation8] ss:$0 sm:$0xff] }
  0x73   : > { %924 = vadd.xlane.f32.xlu0 %v923_v1 }
  0x78   : > { %v2456_v5 = vpop.eup %2455 }
  0x79   : > { %v930_v6 = vmul.f32 32.0, %v2456_v5  ;;  %vm934_vm1 = vweird.f32 %v2456_v5 }
  0x7b   : > { %927 = vadd.xlane.f32.xlu0 %v926_v3  ;;  %v931_v7 = vsub.f32 1.0, %v930_v6 }
  0x7d   : > { %v932_v8 = vmul.f32 %v2456_v5, %v931_v7 }
  0x7f   : > { %v933_v9 = vadd.f32 %v2456_v5, %v932_v8 }
  0x81   : > { %v935_v10 = vsel %vm934_vm1, %v2456_v5, %v933_v9 }
  0xe6   : > { %v925_v11 = vpop.xlane.xlu0 %924 }
  0xe7   : > { %v936_v12 = vmul.f32 %v935_v10, %v925_v11 }
  0xe9   : > { %v938_v13 = vsub.f32 %v918_v0, %v936_v12 }
  0xeb   : > { %v940_v14 = vmul.f32 %v938_v13, %v938_v13 }
  0xed   : > { %v942_v15 = vsel %vm922_vm0, %v940_v14, 0.0 }
  0xee   : > { %943 = vadd.xlane.f32.xlu1 %v942_v15  ;;  %v928_v16 = vpop.xlane.xlu0 %927 }
  0xef   : > { %v937_v17 = vmul.f32 %v935_v10, %v928_v16 }
  0xf1   : > { %v939_v18 = vsub.f32 %v919_v2, %v937_v17 }
  0xf3   : > { %v941_v19 = vmul.f32 %v939_v18, %v939_v18 }
  0xf5   : > { %v945_v20 = vsel %vm922_vm0, %v941_v19, 0.0 }
  0xf6   : > { %946 = vadd.xlane.f32.xlu1 %v945_v20 }
 0x161   : > { %v944_v21 = vpop.xlane.xlu1 %943 }
 0x162   : > { %v948_v22 = vmul.f32 %v944_v21, %v935_v10 }
 0x164   : > { %v950_v23 = vadd.f32 1e-05, %v948_v22 }
 0x166   : > { %2457 = vrsqrt.f32 %v950_v23  ;;  %vm958_vm3 = vweird.f32 %v950_v23 }
 0x169   : > { %v947_v24 = vpop.xlane.xlu1 %946 }
 0x16a   : > { %v949_v25 = vmul.f32 %v947_v24, %v935_v10 }
 0x16c   : > { %v2458_v26 = vpop.eup %2457  ;;  %v951_v27 = vadd.f32 1e-05, %v949_v25 }
 0x16d   : > { %v953_v28 = vmul.f32 %v2458_v26, %v950_v23  ;;  %vm959_vm2 = vweird.f32 %v2458_v26 }
 0x16e   : > { %2459 = vrsqrt.f32 %v951_v27  ;;  %vm960_vm4 = vmor %vm958_vm3, %vm959_vm2  ;;  %vm968_vm6 = vweird.f32 %v951_v27 }
 0x16f   : > { %v954_v29 = vmul.f32 %v2458_v26, %v953_v28 }
 0x171   : > { %v955_v30 = vmul.f32 0.5, %v954_v29 }
 0x173   : > { %v956_v31 = vsub.f32 1.5, %v955_v30 }
 0x174   : > { %v2460_v32 = vpop.eup %2459 }
 0x175   : > { %v957_v33 = vmul.f32 %v2458_v26, %v956_v31  ;;  %v963_v34 = vmul.f32 %v2460_v32, %v951_v27  ;;  %vm969_vm5 = vweird.f32 %v2460_v32 }
 0x176   : > { %vm970_vm7 = vmor %vm968_vm6, %vm969_vm5 }
 0x177   : > { %v961_v36 = vsel %vm960_vm4, %v2458_v26, %v957_v33  ;;  %v964_v37 = vmul.f32 %v2460_v32, %v963_v34 }
 0x178   : > { %v972_v39 = vmul.f32 %v961_v36, %v938_v13 }
 0x179   : > { %v965_v40 = vmul.f32 0.5, %v964_v37 }
 0x17a   : > { %v977_v41 = vmul.f32 %v2453_v35, %v972_v39 }
 0x17b   : > { %v966_v42 = vsub.f32 1.5, %v965_v40 }
 0x17c   : > { %v982_v43 = vadd.f32 %v2454_v38, %v977_v41 }
 0x17d   : > { %v967_v44 = vmul.f32 %v2460_v32, %v966_v42 }
 0x17e   : > { %984 = vst.msk [vmem:[#allocation2] sm:$0xff] %vm922_vm0, %v982_v43 }
 0x17f   : > { %v971_v45 = vsel %vm970_vm7, %v2460_v32, %v967_v44 }
 0x180   : > { %v973_v46 = vmul.f32 %v971_v45, %v939_v18 }
 0x182   : > { %v978_v47 = vmul.f32 %v2453_v35, %v973_v46 }
 0x184   : > { %v983_v48 = vadd.f32 %v2454_v38, %v978_v47 }
 0x186   : > { %985 = vst.msk [vmem:[#allocation2 + $0x8] sm:$0xff] %vm922_vm0, %v983_v48 }
 0x187 PF: > { %v2329_v49 = vld [vmem:[%s3110_s3 + $0x8] sm:$0xff]  ;;  %v2328_v50 = vld [vmem:[%s3110_s3] sm:$0xff]  ;;  %vm1010_vm8 = vcmask 261120   ;;  %s3468_s27 = sld [smem:[#allocation34_spill]]  ;;  %s2821_s3 = smov 120   ;;  %vm1031_vm9 = vcmask 64512  }
 0x188   : > { %v3161_v51 = vld [vmem:[#allocation2] sm:$0xff]  ;;  %1020 = vmatpush.bf16.msra.mxu0 %v2329_v49  ;;  %s2822_s14 = smov 96   ;;  %s2823_s18 = smov 64   ;;  %vm1168_vm10 = vcmask 130112   ;;  %vm1241_vm11 = vcmask 195712   ;;  %vm1314_vm12 = vcmask 261312  }
 0x189   : > { %s2824_s26 = smov 80   ;;  %s2825_s0 = smov 112   ;;  %vm1798_vm4 = vcmask 523264  }
 0x18a   : > { %s3470_s19 = sld [smem:[#allocation30_spill]]  ;;  %s2826_s1 = smov 88  }
 0x18b   : > { %s2827_s15 = smov 48   ;;  %s2828_s5 = smov 72  }
 0x18c   : > { %1021 = vmatpush.bf16.msra.mxu0 %v2328_v50  ;;  %p2313_p1 = scmp.ne.s32.totalorder %s2975_s4, 1 }
 0x18d   : > { %v3163_v52 = vld [vmem:[#allocation2 + $0x8] sm:$0xff]  ;;  %s3469_s30 = scalar_lea.vmem %s3468_s27, %s3100_s2  ;;  %s2829_s27 = smov 56  }
 0x18e   : > { %v989_v53 = vpack.c.bf16 %v3163_v52, %v3161_v51  ;;  %v3173_v54 = vld [vmem:[%s3469_s30] ss:$0 sm:$0xff]  ;;  %s2830_s30 = smov 104  }
 0x190   : > { %2253 = vmatmul.msk.bf16.vlgmr.msra.gmra.mxu0 %vm1010_vm8, %v989_v53  ;;  %v3195_v61 = vld [vmem:[%s3470_s19] sm:$0x3]  ;;  %s3472_s19 = scalar_lea.vmem %s3415_s8, %s3100_s2 }
 0x191   : > { %v3198_v62 = vperm.slane %v3195_v61, 0 }
 0x20d   : > { %v1023_v55 = vpop.f32.mrf.mxu0 }
 0x20e   : > { %v3176_v56 = vadd.f32 %v3173_v54, %v1023_v55 }
 0x210   : > { %1097 = vrot.lane.b32.xlu2 %v3176_v56, %s2821_s3  ;;  %1029 = vrot.lane.b32.xlu0 %v3176_v56, %s2822_s14 }
 0x215   : > { %v1025_v22 = vpop.f32.mrf.mxu0 }
 0x216   : > { %v3217_v23 = vadd.f32 %v3173_v54, %v1025_v22 }
 0x218   : > { %1070 = vrot.lane.b32.xlu2 %v3176_v56, %s2823_s18 }
 0x220   : > { %1172 = vrot.lane.b32.xlu2 %v3176_v56, %s2824_s26 }
 0x228   : > { %1170 = vrot.lane.b32.xlu2 %v3176_v56, %s2825_s0 }
 0x26a   : > { %v1098_v57 = vpop.permute.xlu2 %1097 }
 0x272   : > { %v1071_v58 = vpop.permute.xlu2 %1070 }
 0x27a   : > { %v1173_v60 = vpop.permute.xlu2 %1172 }
 0x282   : > { %v1030_v59 = vpop.permute.xlu0 %1029  ;;  %v1171_v11 = vpop.permute.xlu2 %1170 }
 0x283   : > { %2254 = vmatpush.xpose.msk.msra.mxu1 %vm1031_vm9, %v1030_v59  ;;  %v1344_v59 = vperm.slane %v3195_v61, 1 }
 0x286   : > { %2255 = vmatmul.msk.f32.vlgmr.msra.gmra.mxu1 %vm1031_vm9, %v3176_v56 }
 0x287   : > { %1091 = vmatpush.msrb.mxu1 %v1071_v58 }
 0x289   : > { %2260 = vmatpush.xpose.msk.msra.mxu1 %vm1031_vm9, %v1173_v60 }
 0x303   : > { %v1053_v63 = vpop.f32.mrf.mxu1 }
 0x304   : > { %v1056_v0 = vmul.f32 0.35355338, %v1053_v63 }
 0x306   : > { %v1058_v1 = vadd.f32 %v3198_v62, %v1056_v0 }
 0x308   : > { %v1059_v2 = vsel %vm1031_vm9, %v1058_v1, -inf }
 0x309   : > { %1060 = vmax.xlane.f32.xlu0 %v1059_v2 }
 0x37c   : > { %v1061_v3 = vpop.xlane.xlu0 %1060 }
 0x37d   : > { %v1062_v4 = vsub.f32 %v1058_v1, %v1061_v3 }
 0x37f   : > { %v1063_v5 = vmul.f32 1.442695, %v1062_v4 }
 0x381   : > { %2469 = vpow2.f32 %v1063_v5 }
 0x387   : > { %v2470_v6 = vpop.eup %2469 }
 0x388   : > { %v1065_v7 = vsel %vm1031_vm9, %v2470_v6, 0.0 }
 0x389   : > { %1066 = vadd.xlane.f32.xlu1 %v1065_v7 }
 0x3a2   : > { %1099 = vrot.lane.b32.xlu1 %v3176_v56, %s2826_s1 }
 0x3fc   : > { %v1067_v8 = vpop.xlane.xlu1 %1066 }
 0x3fd   : > { %2471 = vrcp.f32 %v1067_v8 }
 0x403   : > { %v2472_v9 = vpop.eup %2471 }
 0x404   : > { %v1069_v10 = vmul.f32 %v2472_v9, %v2470_v6 }
 0x406   : > { %2256 = vmatmul.msk.f32.vlgmr.msrb.gmra.mxu1 %vm1031_vm9, %v1069_v10 }
 0x40e   : > { %2261 = vmatmul.msk.f32.vlgmr.msra.gmra.mxu1 %vm1031_vm9, %v1171_v11 }
 0x414   : > { %v1100_v12 = vpop.permute.xlu1 %1099 }
 0x415   : > { %2257 = vmatpush.xpose.msk.msra.mxu3 %vm1031_vm9, %v1100_v12 }
 0x418   : > { %2258 = vmatmul.msk.f32.vlgmr.msra.gmra.mxu3 %vm1031_vm9, %v1098_v57 }
 0x483   : > { %v1093_v13 = vpop.f32.mrf.mxu1 }
 0x484   : > { %1096 = vst.msk [vmem:[#allocation3] sm:$0xff] %vm1031_vm9, %v1093_v13 }
 0x48b   : > { %v1195_v14 = vpop.f32.mrf.mxu1 }
 0x48c   : > { %v1198_v15 = vmul.f32 0.35355338, %v1195_v14 }
 0x48e   : > { %v1199_v16 = vadd.f32 %v1198_v15, %v3198_v62 }
 0x490   : > { %v1200_v17 = vsel %vm1031_vm9, %v1199_v16, -inf }
 0x491   : > { %1201 = vmax.xlane.f32.xlu1 %v1200_v17 }
 0x49b   : > { %v1122_v18 = vpop.f32.mrf.mxu3 }
 0x49c   : > { %v1125_v19 = vmul.f32 0.35355338, %v1122_v18 }
 0x49e   : > { %v1126_v20 = vadd.f32 %v1125_v19, %v3198_v62 }
 0x4a0   : > { %v1127_v21 = vsel %vm1031_vm9, %v1126_v20, -inf }
 0x4a1   : > { %1128 = vmax.xlane.f32.xlu2 %v1127_v21 }
 0x4aa   : > { %1211 = vrot.lane.b32.xlu1 %v3176_v56, %s2827_s15 }
 0x4b2   : > { %1384 = vrot.lane.b32.xlu1 %v3217_v23, %s2821_s3  ;;  %s2831_s3 = smov 40  }
 0x4b9   : > { %1245 = vrot.lane.b32.xlu2 %v3176_v56, %s2828_s5 }
 0x4ba   : > { %1456 = vrot.lane.b32.xlu1 %v3217_v23, %s2825_s0 }
 0x4c1   : > { %1386 = vrot.lane.b32.xlu2 %v3217_v23, %s2826_s1 }
 0x4c9   : > { %1530 = vrot.lane.b32.xlu2 %v3217_v23, %s2828_s5  ;;  %s3477_s5 = sld [smem:[#allocation43_spill]] (!%p2313_p1) }
 0x504   : > { %v1202_v24 = vpop.xlane.xlu1 %1201 }
 0x505   : > { %v1203_v31 = vsub.f32 %v1199_v16, %v1202_v24 }
 0x507   : > { %v1204_v32 = vmul.f32 1.442695, %v1203_v31 }
 0x514   : > { %v1129_v25 = vpop.xlane.xlu2 %1128 }
 0x515   : > { %v1130_v26 = vsub.f32 %v1126_v20, %v1129_v25 }
 0x517   : > { %v1131_v27 = vmul.f32 1.442695, %v1130_v26 }
 0x519   : > { %2473 = vpow2.f32 %v1131_v27 }
 0x51a   : > { %2475 = vpow2.f32 %v1204_v32 }
 0x51c   : > { %v1212_v28 = vpop.permute.xlu1 %1211  ;;  %v1246_v36 = vpop.permute.xlu2 %1245 }
 0x51d   : > { %1232 = vmatpush.msrb.mxu3 %v1212_v28 }
 0x51f   : > { %v2474_v29 = vpop.eup %2473 }
 0x520   : > { %v1133_v30 = vsel %vm1031_vm9, %v2474_v29, 0.0  ;;  %v2476_v33 = vpop.eup %2475 }
 0x521   : > { %1134 = vadd.xlane.f32.xlu0 %v1133_v30  ;;  %v1206_v34 = vsel %vm1031_vm9, %v2476_v33, 0.0 }
 0x524   : > { %v1387_v38 = vpop.permute.xlu2 %1386  ;;  %v1385_v44 = vpop.permute.xlu1 %1384 }
 0x52c   : > { %v1531_v42 = vpop.permute.xlu2 %1530  ;;  %v1457_v50 = vpop.permute.xlu1 %1456 }
 0x535   : > { %1138 = vrot.lane.b32.xlu0 %v3176_v56, %s2829_s27 }
 0x53d   : > { %1243 = vrot.lane.b32.xlu0 %v3176_v56, %s2830_s30 }
 0x545   : > { %1317 = vrot.lane.b32.xlu0 %v3217_v23, %s2822_s14  ;;  %s2832_s14 = smov 8  }
 0x54d   : > { %1458 = vrot.lane.b32.xlu0 %v3217_v23, %s2824_s26  ;;  %s2833_s26 = smov 16  }
 0x577   : > { %1207 = vadd.xlane.f32.xlu0 %v1206_v34 }
 0x58b   : > { %1528 = vrot.lane.b32.xlu0 %v3217_v23, %s2830_s30 }
 0x594   : > { %v1135_v35 = vpop.xlane.xlu0 %1134 }
 0x595   : > { %2477 = vrcp.f32 %v1135_v35 }
 0x59b   : > { %v2478_v37 = vpop.eup %2477 }
 0x59c   : > { %v1137_v40 = vmul.f32 %v2478_v37, %v2474_v29 }
 0x5a7   : > { %v1139_v39 = vpop.permute.xlu0 %1138 }
 0x5a8   : > { %1159 = vmatpush.msra.mxu2 %v1139_v39 }
 0x5a9   : > { %2259 = vmatmul.msk.f32.vlgmr.msra.gmra.mxu2 %vm1031_vm9, %v1137_v40 }
 0x5aa   : > { %2263 = vmatpush.xpose.msk.msrb.mxu2 %vm1031_vm9, %v1246_v36 }
 0x5ae   : > { %2269 = vmatpush.xpose.msk.msra.mxu2 %vm1031_vm9, %v1387_v38 }
 0x5af   : > { %v1244_v41 = vpop.permute.xlu0 %1243 }
 0x5b1   : > { %2264 = vmatmul.msk.f32.vlgmr.msrb.gmra.mxu2 %vm1031_vm9, %v1244_v41 }
 0x5b2   : > { %2275 = vmatpush.xpose.msk.msrb.mxu2 %vm1031_vm9, %v1531_v42 }
 0x5b7   : > { %v1318_v43 = vpop.permute.xlu0 %1317 }
 0x5b8   : > { %2266 = vmatpush.xpose.msk.msra.mxu3 %vm1031_vm9, %v1318_v43 }
 0x5b9   : > { %2270 = vmatmul.msk.f32.vlgmr.msra.gmra.mxu2 %vm1031_vm9, %v1385_v44 }
 0x5bf   : > { %v1459_v45 = vpop.permute.xlu0 %1458 }
 0x5ea   : > { %v1208_v46 = vpop.xlane.xlu0 %1207 }
 0x5eb   : > { %2479 = vrcp.f32 %v1208_v46 }
 0x5f1   : > { %v2480_v47 = vpop.eup %2479 }
 0x5f2   : > { %v1210_v48 = vmul.f32 %v2480_v47, %v2476_v33 }
 0x5f4   : > { %2262 = vmatmul.msk.f32.vlgmr.msrb.gmra.mxu3 %vm1031_vm9, %v1210_v48 }
 0x5f5   : > { %2272 = vmatpush.xpose.msk.msrb.mxu3 %vm1031_vm9, %v1459_v45 }
 0x5fc   : > { %2267 = vmatmul.msk.f32.vlgmr.msra.gmra.mxu3 %vm1031_vm9, %v3217_v23 }
 0x5fd   : > { %v1529_v49 = vpop.permute.xlu0 %1528 }
 0x5fe   : > { %2276 = vmatmul.msk.f32.vlgmr.msrb.gmra.mxu2 %vm1031_vm9, %v1529_v49 }
 0x604   : > { %2273 = vmatmul.msk.f32.vlgmr.msrb.gmra.mxu3 %vm1031_vm9, %v1457_v50 }
 0x62c   : > { %v1161_v53 = vpop.f32.mrf.mxu2 }
 0x634   : > { %v1268_v54 = vpop.f32.mrf.mxu2 }
 0x635   : > { %v1271_v55 = vmul.f32 0.35355338, %v1268_v54 }
 0x637   : > { %v1272_v57 = vadd.f32 %v1271_v55, %v3198_v62 }
 0x639   : > { %v1273_v58 = vsel %vm1031_vm9, %v1272_v57, -inf }
 0x63a   : > { %1274 = vmax.xlane.f32.xlu2 %v1273_v58 }
 0x63c   : > { %v1409_v60 = vpop.f32.mrf.mxu2 }
 0x63d   : > { %v1412_v63 = vmul.f32 0.35355338, %v1409_v60 }
 0x63f   : > { %v1413_v0 = vadd.f32 %v1412_v63, %v1344_v59 }
 0x641   : > { %v1414_v1 = vsel %vm1031_vm9, %v1413_v0, -inf }
 0x642   : > { %1415 = vmax.xlane.f32.xlu0 %v1414_v1 }
 0x677   : > { %v1234_v2 = vpop.f32.mrf.mxu3 }
 0x67f   : > { %v1340_v3 = vpop.f32.mrf.mxu3 }
 0x680   : > { %v1343_v4 = vmul.f32 0.35355338, %v1340_v3 }
 0x681   : > { %v1553_v5 = vpop.f32.mrf.mxu2 }
 0x682   : > { %v1345_v6 = vadd.f32 %v1344_v59, %v1343_v4  ;;  %v1556_v7 = vmul.f32 0.35355338, %v1553_v5  ;;  %v2331_v5 = vld [vmem:[%s3115_s25 + $0x8] sm:$0xff] }
 0x683   : > { %1632 = vmatpush.bf16.msra.mxu3 %v2331_v5 }
 0x684   : > { %v1346_v8 = vsel %vm1031_vm9, %v1345_v6, -inf  ;;  %v1557_v62 = vadd.f32 %v1556_v7, %v1344_v59 }
 0x685   : > { %1347 = vmax.xlane.f32.xlu1 %v1346_v8 }
 0x686   : > { %v1558_v9 = vsel %vm1031_vm9, %v1557_v62, -inf }
 0x68d   : > { %1559 = vmax.xlane.f32.xlu1 %v1558_v9 }
 0x6ad   : > { %v1275_v61 = vpop.xlane.xlu2 %1274 }
 0x6ae   : > { %v1276_v10 = vsub.f32 %v1272_v57, %v1275_v61 }
 0x6b0   : > { %v1277_v11 = vmul.f32 1.442695, %v1276_v10 }
 0x6b2   : > { %2481 = vpow2.f32 %v1277_v11 }
 0x6b5   : > { %v1416_v12 = vpop.xlane.xlu0 %1415 }
 0x6b6   : > { %v1417_v13 = vsub.f32 %v1413_v0, %v1416_v12 }
 0x6b8   : > { %v2482_v14 = vpop.eup %2481  ;;  %v1418_v15 = vmul.f32 1.442695, %v1417_v13 }
 0x6b9   : > { %v1279_v16 = vsel %vm1031_vm9, %v2482_v14, 0.0 }
 0x6ba   : > { %2483 = vpow2.f32 %v1418_v15  ;;  %1280 = vadd.xlane.f32.xlu0 %v1279_v16 }
 0x6c0   : > { %v3257_v17 = vpop.eup %2483 }
 0x6c1   : > { %v1420_v18 = vsel %vm1031_vm9, %v3257_v17, 0.0 }
 0x6c2   : > { %1421 = vadd.xlane.f32.xlu1 %v1420_v18 }
 0x6ce   : > { %1284 = vrot.lane.b32.xlu0 %v3176_v56, %s2831_s3  ;;  %v1481_v56 = vpop.f32.mrf.mxu3 }
 0x6cf   : > { %v1484_v26 = vmul.f32 0.35355338, %v1481_v56 }
 0x6d1   : > { %v1485_v29 = vadd.f32 %v1484_v26, %v1344_v59 }
 0x6d3   : > { %v1486_v30 = vsel %vm1031_vm9, %v1485_v29, -inf }
 0x6d6   : > { %1497 = vrot.lane.b32.xlu0 %v3217_v23, %s2827_s15 }
 0x6db   : > { %1357 = vrot.lane.b32.xlu1 %v3217_v23, %s2823_s18  ;;  %s2834_s18 = smov 24  }
 0x6de   : > { %1569 = vrot.lane.b32.xlu0 %v3217_v23, %s2831_s3 }
 0x6e3   : > { %1165 = vrot.lane.b32.xlu1 %v1161_v53, %s2832_s14 }
 0x6eb   : > { %1238 = vrot.lane.b32.xlu1 %v1234_v2, %s2833_s26 }
 0x6f8   : > { %v1348_v19 = vpop.xlane.xlu1 %1347 }
 0x6f9   : > { %v1349_v25 = vsub.f32 %v1345_v6, %v1348_v19  ;;  %v2330_v6 = vld [vmem:[%s3115_s25] sm:$0xff]  ;;  %s3471_s25 = scalar_lea.vmem %s3414_s7, %s3100_s2  ;;  %s3474_s2 = sld [smem:[#allocation41_spill]] (!%p2313_p1) }
 0x6fa   : > { %1633 = vmatpush.bf16.msra.mxu3 %v2330_v6  ;;  %v2462_v12 = vld [vmem:[%s3471_s25] ss:$0 sm:$0xff]  ;;  %s3475_s25 = sld [smem:[#allocation40_spill]] (!%p2313_p1) }
 0x6fb   : > { %v1350_v28 = vmul.f32 1.442695, %v1349_v25 }
 0x700   : > { %v1560_v20 = vpop.xlane.xlu1 %1559 }
 0x701   : > { %v1561_v21 = vsub.f32 %v1557_v62, %v1560_v20 }
 0x703   : > { %v1562_v22 = vmul.f32 1.442695, %v1561_v21  ;;  %v2835_v21 = vmov 32.0  }
 0x705   : > { %2485 = vpow2.f32 %v1562_v22 }
 0x706   : > { %2487 = vpow2.f32 %v1350_v28 }
 0x70b   : > { %v2486_v24 = vpop.eup %2485 }
 0x70c   : > { %v1564_v27 = vsel %vm1031_vm9, %v2486_v24, 0.0  ;;  %v2488_v31 = vpop.eup %2487 }
 0x70d   : > { %1565 = vadd.xlane.f32.xlu2 %v1564_v27  ;;  %v1352_v32 = vsel %vm1031_vm9, %v2488_v31, 0.0 }
 0x715   : > { %1487 = vmax.xlane.f32.xlu2 %v1486_v30 }
 0x71d   : > { %1353 = vadd.xlane.f32.xlu2 %v1352_v32 }
 0x72d   : > { %v1281_v33 = vpop.xlane.xlu0 %1280 }
 0x72e   : > { %2489 = vrcp.f32 %v1281_v33 }
 0x734   : > { %v2490_v34 = vpop.eup %2489 }
 0x735   : > { %v1283_v35 = vmul.f32 %v2490_v34, %v2482_v14  ;;  %v1422_v37 = vpop.xlane.xlu1 %1421 }
 0x740   : > { %v1285_v36 = vpop.permute.xlu0 %1284 }
 0x741   : > { %1305 = vmatpush.msrb.mxu1 %v1285_v36  ;;  %v2333_v36 = vld [vmem:[%s3132_s17 + $0x8] sm:$0xff] }
 0x742   : > { %2265 = vmatmul.msk.f32.vlgmr.msrb.gmra.mxu1 %vm1031_vm9, %v1283_v35 }
 0x748   : > { %v1498_v39 = vpop.permute.xlu0 %1497 }
 0x74d   : > { %v1358_v38 = vpop.permute.xlu1 %1357 }
 0x74e   : > { %1378 = vmatpush.msrb.mxu0 %v1358_v38 }
 0x750   : > { %1518 = vmatpush.msra.mxu0 %v1498_v39  ;;  %v1570_v60 = vpop.permute.xlu0 %1569  ;;  %v2332_v39 = vld [vmem:[%s3132_s17] sm:$0xff] }
 0x755   : > { %v1166_v40 = vpop.permute.xlu1 %1165 }
 0x756   : > { %1169 = vst.msk [vmem:[#allocation3] sm:$0xff] %vm1168_vm10, %v1166_v40 }
 0x75d   : > { %v1239_v41 = vpop.permute.xlu1 %1238 }
 0x75e   : > { %1242 = vst.msk [vmem:[#allocation3] sm:$0xff] %vm1241_vm11, %v1239_v41 }
 0x780   : > { %v1566_v42 = vpop.xlane.xlu2 %1565 }
 0x788   : > { %v1488_v43 = vpop.xlane.xlu2 %1487 }
 0x789   : > { %v1489_v44 = vsub.f32 %v1485_v29, %v1488_v43 }
 0x78b   : > { %v1490_v45 = vmul.f32 1.442695, %v1489_v44 }
 0x78d   : > { %2491 = vpow2.f32 %v1490_v45 }
 0x790   : > { %v1354_v46 = vpop.xlane.xlu2 %1353 }
 0x791   : > { %2493 = vrcp.f32 %v1354_v46 }
 0x792   : > { %2495 = vrcp.f32 %v1422_v37 }
 0x793   : > { %v2492_v47 = vpop.eup %2491 }
 0x794   : > { %v1492_v48 = vsel %vm1031_vm9, %v2492_v47, 0.0 }
 0x795   : > { %1493 = vadd.xlane.f32.xlu2 %v1492_v48 }
 0x797   : > { %v2494_v49 = vpop.eup %2493 }
 0x798   : > { %v1356_v50 = vmul.f32 %v2494_v49, %v2488_v31  ;;  %v2496_v54 = vpop.eup %2495 }
 0x799   : > { %v1424_v57 = vmul.f32 %v2496_v54, %v3257_v17 }
 0x79a   : > { %2268 = vmatmul.msk.f32.vlgmr.msrb.gmra.mxu0 %vm1031_vm9, %v1356_v50 }
 0x79b   : > { %1735 = vmatpush.bf16.msrb.mxu0 %v2333_v36 }
 0x79f   : > { %1736 = vmatpush.bf16.msrb.mxu0 %v2332_v39 }
 0x7ad   : > { %1425 = vrot.lane.b32.xlu2 %v3217_v23, %s2829_s27 }
 0x7bf   : > { %v1307_v1 = vpop.f32.mrf.mxu1 }
 0x808   : > { %v1494_v53 = vpop.xlane.xlu2 %1493 }
 0x809   : > { %2497 = vrcp.f32 %v1494_v53 }
 0x80a   : > { %2499 = vrcp.f32 %v1566_v42 }
 0x80b   : > { %2501 = vrcp.f32 %v2835_v21 }
 0x80f   : > { %v2498_v55 = vpop.eup %2497 }
 0x810   : > { %v1496_v58 = vmul.f32 %v2498_v55, %v2492_v47  ;;  %v1426_v59 = vpop.permute.xlu2 %1425  ;;  %v2500_v63 = vpop.eup %2499 }
 0x811   : > { %1446 = vmatpush.msra.mxu1 %v1426_v59  ;;  %v1568_v0 = vmul.f32 %v2500_v63, %v2486_v24  ;;  %v2502_v22 = vpop.eup %2501  ;;  %v2463_v59 = vld [vmem:[%s3472_s19] ss:$0 sm:$0xff]  ;;  %s3476_s19 = sld [smem:[#allocation42_spill]] (!%p2313_p1) }
 0x812   : > { %2271 = vmatmul.msk.f32.vlgmr.msra.gmra.mxu1 %vm1031_vm9, %v1424_v57  ;;  %2274 = vmatmul.msk.f32.vlgmr.msra.gmra.mxu0 %vm1031_vm9, %v1496_v58  ;;  %v1651_v56 = vmul.f32 32.0, %v2502_v22  ;;  %vm1655_vm13 = vweird.f32 %v2502_v22 }
 0x813   : > { %1590 = vmatpush.msrb.mxu1 %v1570_v60 }
 0x814   : > { %v1652_v24 = vsub.f32 1.0, %v1651_v56 }
 0x816   : > { %v1653_v25 = vmul.f32 %v2502_v22, %v1652_v24 }
 0x817   : > { %v1380_v23 = vpop.f32.mrf.mxu0 }
 0x818   : > { %1383 = vst.msk [vmem:[#allocation3 + $0x8] sm:$0xff] %vm1031_vm9, %v1380_v23  ;;  %v1654_v26 = vadd.f32 %v2502_v22, %v1653_v25 }
 0x81a   : > { %2277 = vmatmul.msk.f32.vlgmr.msrb.gmra.mxu1 %vm1031_vm9, %v1568_v0  ;;  %v2464_v0 = vld [vmem:[%s880_s23] ss:$0 sm:$0xff] }
 0x88f   : > { %v1448_v2 = vpop.f32.mrf.mxu1  ;;  %v1520_v3 = vpop.f32.mrf.mxu0 }
 0x890   : > { %1452 = vrot.lane.b32.xlu0 %v1448_v2, %s2832_s14  ;;  %1524 = vrot.lane.b32.xlu2 %v1520_v3, %s2833_s26 }
 0x897   : > { %v1592_v4 = vpop.f32.mrf.mxu1 }
 0x898   : > { %1311 = vrot.lane.b32.xlu0 %v1307_v1, %s2834_s18  ;;  %1596 = vrot.lane.b32.xlu1 %v1592_v4, %s2834_s18 }
 0x8ea   : > { %v1525_v8 = vpop.permute.xlu2 %1524 }
 0x902   : > { %v1453_v7 = vpop.permute.xlu0 %1452 }
 0x903   : > { %1455 = vst.msk [vmem:[#allocation3 + $0x8] sm:$0xff] %vm1168_vm10, %v1453_v7  ;;  %v2337_v7 = vld [vmem:[%s3142_s13 + $0x18] sm:$0xff] }
 0x904   : > { %1527 = vst.msk [vmem:[#allocation3 + $0x8] sm:$0xff] %vm1241_vm11, %v1525_v8  ;;  %1806 = vmatpush.bf16.msra.mxu2 %v2337_v7  ;;  %v2336_v8 = vld [vmem:[%s3142_s13 + $0x10] sm:$0xff] }
 0x908   : > { %1807 = vmatpush.bf16.msra.mxu2 %v2336_v8  ;;  %v2468_v8 = vld [vmem:[%s3092_s6] ss:$0 sm:$0xff] }
 0x90a   : > { %v1312_v62 = vpop.permute.xlu0 %1311  ;;  %v1597_v9 = vpop.permute.xlu1 %1596 }
 0x90b   : > { %1315 = vst.msk [vmem:[#allocation3] sm:$0xff] %vm1314_vm12, %v1312_v62  ;;  %v2335_v62 = vld [vmem:[%s3142_s13 + $0x8] sm:$0xff] }
 0x90c   : > { %1599 = vst.msk [vmem:[#allocation3 + $0x8] sm:$0xff] %vm1314_vm12, %v1597_v9  ;;  %1808 = vmatpush.bf16.msra.mxu2 %v2335_v62  ;;  %v2334_v9 = vld [vmem:[%s3142_s13] sm:$0xff] }
 0x910   : > { %1809 = vmatpush.bf16.msra.mxu2 %v2334_v9 }
 0x912   : > { %v1600_v61 = vld [vmem:[#allocation3] sm:$0xff] }
 0x913   : > { %v1601_v10 = vld [vmem:[#allocation3 + $0x8] sm:$0xff] }
 0x914   : > { %v1602_v11 = vpack.c.bf16 %v1601_v10, %v1600_v61  ;;  %v2465_v61 = vld [vmem:[%s888_s16] ss:$0 sm:$0xff] }
 0x916   : > { %2286 = vmatmul.msk.bf16.vlgmr.msra.gmra.mxu3 %vm1010_vm8, %v1602_v11 }
 0x999   : > { %v1635_v13 = vpop.f32.mrf.mxu3 }
 0x99a   : > { %v1636_v14 = vadd.f32 %v2462_v12, %v1635_v13 }
 0x99c   : > { %v1640_v15 = vadd.f32 %v1636_v14, %v3161_v51  ;;  %v3300_v51 = vsel %vm1655_vm13, %v2502_v22, %v1654_v26 }
 0x99e   : > { %v1644_v16 = vsel %vm1010_vm8, %v1640_v15, 0.0 }
 0x99f   : > { %1645 = vadd.xlane.f32.xlu2 %v1644_v16 }
 0x9a1   : > { %v1637_v17 = vpop.f32.mrf.mxu3 }
 0x9a2   : > { %v1638_v18 = vadd.f32 %v2462_v12, %v1637_v17 }
 0x9a4   : > { %v1641_v19 = vadd.f32 %v1638_v18, %v3163_v52 }
 0x9a6   : > { %v1647_v20 = vsel %vm1010_vm8, %v1641_v19, 0.0 }
 0x9a7   : > { %1648 = vadd.xlane.f32.xlu0 %v1647_v20 }
 0xa12   : > { %v1646_v27 = vpop.xlane.xlu2 %1645 }
 0xa13   : > { %v1657_v28 = vmul.f32 %v3300_v51, %v1646_v27 }
 0xa15   : > { %v1659_v29 = vsub.f32 %v1640_v15, %v1657_v28 }
 0xa17   : > { %v1661_v52 = vmul.f32 %v1659_v29, %v1659_v29 }
 0xa19   : > { %v1663_v30 = vsel %vm1010_vm8, %v1661_v52, 0.0 }
 0xa1a   : > { %v1649_v31 = vpop.xlane.xlu0 %1648  ;;  %1664 = vadd.xlane.f32.xlu1 %v1663_v30 }
 0xa1b   : > { %v1658_v32 = vmul.f32 %v3300_v51, %v1649_v31 }
 0xa1d   : > { %v1660_v33 = vsub.f32 %v1641_v19, %v1658_v32  ;;  %v2466_v32 = vld [vmem:[%s896_s22] ss:$0 sm:$0xff] }
 0xa1f   : > { %v1662_v34 = vmul.f32 %v1660_v33, %v1660_v33 }
 0xa21   : > { %v1666_v35 = vsel %vm1010_vm8, %v1662_v34, 0.0 }
 0xa22   : > { %1667 = vadd.xlane.f32.xlu2 %v1666_v35 }
 0xa8d   : > { %v1665_v37 = vpop.xlane.xlu1 %1664 }
 0xa8e   : > { %v1669_v38 = vmul.f32 %v1665_v37, %v3300_v51 }
 0xa90   : > { %v1671_v40 = vadd.f32 1e-05, %v1669_v38 }
 0xa92   : > { %2503 = vrsqrt.f32 %v1671_v40  ;;  %vm1679_vm15 = vweird.f32 %v1671_v40 }
 0xa95   : > { %v1668_v41 = vpop.xlane.xlu2 %1667 }
 0xa96   : > { %v1670_v42 = vmul.f32 %v1668_v41, %v3300_v51 }
 0xa98   : > { %v2504_v43 = vpop.eup %2503  ;;  %v1672_v44 = vadd.f32 1e-05, %v1670_v42 }
 0xa99   : > { %v1674_v45 = vmul.f32 %v2504_v43, %v1671_v40  ;;  %vm1680_vm14 = vweird.f32 %v2504_v43 }
 0xa9a   : > { %2505 = vrsqrt.f32 %v1672_v44  ;;  %vm1681_vm0 = vmor %vm1679_vm15, %vm1680_vm14  ;;  %vm1689_vm2 = vweird.f32 %v1672_v44 }
 0xa9b   : > { %v1675_v46 = vmul.f32 %v2504_v43, %v1674_v45 }
 0xa9d   : > { %v1676_v47 = vmul.f32 0.5, %v1675_v46 }
 0xa9f   : > { %v1677_v48 = vsub.f32 1.5, %v1676_v47 }
 0xaa0   : > { %v2506_v49 = vpop.eup %2505 }
 0xaa1   : > { %v1678_v50 = vmul.f32 %v2504_v43, %v1677_v48  ;;  %v1684_v53 = vmul.f32 %v2506_v49, %v1672_v44  ;;  %vm1690_vm1 = vweird.f32 %v2506_v49 }
 0xaa2   : > { %vm1691_vm3 = vmor %vm1689_vm2, %vm1690_vm1 }
 0xaa3   : > { %v1685_v54 = vmul.f32 %v2506_v49, %v1684_v53  ;;  %v1682_v55 = vsel %vm1681_vm0, %v2504_v43, %v1678_v50 }
 0xaa4   : > { %v1693_v60 = vmul.f32 %v1682_v55, %v1659_v29 }
 0xaa5   : > { %v1686_v57 = vmul.f32 0.5, %v1685_v54 }
 0xaa6   : > { %v1698_v1 = vmul.f32 %v2463_v59, %v1693_v60 }
 0xaa7   : > { %v1687_v58 = vsub.f32 1.5, %v1686_v57 }
 0xaa8   : > { %v1703_v4 = vadd.f32 %v2464_v0, %v1698_v1 }
 0xaa9   : > { %v1688_v63 = vmul.f32 %v2506_v49, %v1687_v58 }
 0xaab   : > { %v1692_v23 = vsel %vm1691_vm3, %v2506_v49, %v1688_v63 }
 0xaac   : > { %v1694_v2 = vmul.f32 %v1692_v23, %v1660_v33 }
 0xaae   : > { %v1699_v3 = vmul.f32 %v2463_v59, %v1694_v2 }
 0xab0   : > { %v1704_v5 = vadd.f32 %v2464_v0, %v1699_v3 }
 0xab2   : > { %v1705_v6 = vpack.c.bf16 %v1704_v5, %v1703_v4 }
 0xab4   : > { %2295 = vmatmul.msk.bf16.vlgmr.msrb.gmra.mxu0 %vm1010_vm8, %v1705_v6 }
 0xb31   : > { %v1738_v10 = vpop.f32.mrf.mxu0 }
 0xb32   : > { %v1739_v11 = vadd.f32 %v2465_v61, %v1738_v10 }
 0xb34   : > { %v1745_v12 = vmul.f32 0.044715, %v1739_v11  ;;  %v1743_v27 = vmul.f32 0.5, %v1739_v11 }
 0xb36   : > { %v1747_v13 = vmul.f32 %v1745_v12, %v1739_v11 }
 0xb38   : > { %v1749_v14 = vmul.f32 %v1747_v13, %v1739_v11 }
 0xb39   : > { %v1740_v15 = vpop.f32.mrf.mxu0 }
 0xb3a   : > { %v1751_v16 = vadd.f32 %v1749_v14, %v1739_v11  ;;  %v1741_v17 = vadd.f32 %v2465_v61, %v1740_v15 }
 0xb3c   : > { %v1746_v18 = vmul.f32 0.044715, %v1741_v17  ;;  %v1753_v19 = vmul.f32 0.7978846, %v1751_v16  ;;  %v1744_v28 = vmul.f32 0.5, %v1741_v17 }
 0xb3e   : > { %v1748_v20 = vmul.f32 %v1746_v18, %v1741_v17  ;;  %2507 = vtanh.f32 %v1753_v19 }
 0xb40   : > { %v1750_v21 = vmul.f32 %v1748_v20, %v1741_v17 }
 0xb42   : > { %v1752_v22 = vadd.f32 %v1750_v21, %v1741_v17 }
 0xb44   : > { %v1754_v56 = vmul.f32 0.7978846, %v1752_v22  ;;  %v2508_v24 = vpop.eup %2507 }
 0xb45   : > { %v1757_v25 = vadd.f32 1.0, %v2508_v24 }
 0xb46   : > { %2509 = vtanh.f32 %v1754_v56 }
 0xb47   : > { %v1759_v52 = vmul.f32 %v1757_v25, %v1743_v27 }
 0xb4c   : > { %v2510_v26 = vpop.eup %2509 }
 0xb4d   : > { %v1758_v29 = vadd.f32 1.0, %v2510_v26 }
 0xb4f   : > { %v1760_v30 = vmul.f32 %v1758_v29, %v1744_v28 }
 0xb51   : > { %v1761_v31 = vpack.c.bf16 %v1760_v30, %v1759_v52 }
 0xb53   : > { %2312 = vmatmul.msk.bf16.vlgmr.msra.gmra.mxu2 %vm1798_vm4, %v1761_v31 }
 0xbd6   : > { %v1811_v33 = vpop.f32.mrf.mxu2 }
 0xbd7   : > { %v1812_v34 = vadd.f32 %v2466_v32, %v1811_v33 }
 0xbd9   : > { %v1816_v35 = vadd.f32 %v1812_v34, %v1703_v4 }
 0xbdb   : > { %v1820_v36 = vsel %vm1010_vm8, %v1816_v35, 0.0 }
 0xbdc   : > { %1821 = vadd.xlane.f32.xlu0 %v1820_v36 }
 0xbde   : > { %v1813_v37 = vpop.f32.mrf.mxu2 }
 0xbdf   : > { %v1814_v38 = vadd.f32 %v2466_v32, %v1813_v37 }
 0xbe1   : > { %v1817_v39 = vadd.f32 %v1814_v38, %v1704_v5  ;;  %v2467_v5 = vld [vmem:[%s3086_s21] ss:$0 sm:$0xff] }
 0xbe3   : > { %v1823_v40 = vsel %vm1010_vm8, %v1817_v39, 0.0 }
 0xbe4   : > { %1824 = vadd.xlane.f32.xlu1 %v1823_v40 }
 0xc4f   : > { %v1822_v41 = vpop.xlane.xlu0 %1821 }
 0xc50   : > { %v1826_v42 = vmul.f32 %v1822_v41, %v3300_v51 }
 0xc52   : > { %v1828_v43 = vsub.f32 %v1816_v35, %v1826_v42 }
 0xc54   : > { %v1830_v44 = vmul.f32 %v1828_v43, %v1828_v43 }
 0xc56   : > { %v1832_v45 = vsel %vm1010_vm8, %v1830_v44, 0.0 }
 0xc57   : > { %v1825_v46 = vpop.xlane.xlu1 %1824  ;;  %1833 = vadd.xlane.f32.xlu2 %v1832_v45 }
 0xc58   : > { %v1827_v47 = vmul.f32 %v1825_v46, %v3300_v51 }
 0xc5a   : > { %v1829_v48 = vsub.f32 %v1817_v39, %v1827_v47 }
 0xc5c   : > { %v1831_v49 = vmul.f32 %v1829_v48, %v1829_v48 }
 0xc5e   : > { %v1835_v50 = vsel %vm1010_vm8, %v1831_v49, 0.0 }
 0xc5f   : > { %1836 = vadd.xlane.f32.xlu0 %v1835_v50 }
 0xcca   : > { %v1834_v53 = vpop.xlane.xlu2 %1833 }
 0xccb   : > { %v1838_v54 = vmul.f32 %v1834_v53, %v3300_v51 }
 0xccd   : > { %v1840_v55 = vadd.f32 1e-05, %v1838_v54 }
 0xccf   : > { %2511 = vrsqrt.f32 %v1840_v55  ;;  %vm1848_vm6 = vweird.f32 %v1840_v55 }
 0xcd2   : > { %v1837_v57 = vpop.xlane.xlu0 %1836 }
 0xcd3   : > { %v1839_v58 = vmul.f32 %v1837_v57, %v3300_v51 }
 0xcd5   : > { %v2512_v59 = vpop.eup %2511  ;;  %v1841_v60 = vadd.f32 1e-05, %v1839_v58 }
 0xcd6   : > { %v1843_v63 = vmul.f32 %v2512_v59, %v1840_v55  ;;  %vm1849_vm5 = vweird.f32 %v2512_v59 }
 0xcd7   : > { %2513 = vrsqrt.f32 %v1841_v60  ;;  %vm1850_vm7 = vmor %vm1848_vm6, %vm1849_vm5  ;;  %vm1858_vm10 = vweird.f32 %v1841_v60 }
 0xcd8   : > { %v1844_v23 = vmul.f32 %v2512_v59, %v1843_v63 }
 0xcda   : > { %v1845_v0 = vmul.f32 0.5, %v1844_v23 }
 0xcdc   : > { %v1846_v1 = vsub.f32 1.5, %v1845_v0 }
 0xcdd   : > { %v2514_v2 = vpop.eup %2513 }
 0xcde   : > { %v1847_v3 = vmul.f32 %v2512_v59, %v1846_v1  ;;  %v1853_v4 = vmul.f32 %v2514_v2, %v1841_v60  ;;  %vm1859_vm9 = vweird.f32 %v2514_v2 }
 0xcdf   : > { %vm1860_vm11 = vmor %vm1858_vm10, %vm1859_vm9 }
 0xce0   : > { %v1851_v6 = vsel %vm1850_vm7, %v2512_v59, %v1847_v3  ;;  %v1854_v7 = vmul.f32 %v2514_v2, %v1853_v4 }
 0xce1   : > { %v1862_v62 = vmul.f32 %v1851_v6, %v1828_v43 }
 0xce2   : > { %v1855_v51 = vmul.f32 0.5, %v1854_v7 }
 0xce3   : > { %v1867_v9 = vmul.f32 %v2467_v5, %v1862_v62 }
 0xce4   : > { %v1856_v61 = vsub.f32 1.5, %v1855_v51 }
 0xce5   : > { %v1872_v10 = vadd.f32 %v2468_v8, %v1867_v9 }
 0xce6   : > { %v1857_v11 = vmul.f32 %v2514_v2, %v1856_v61 }
 0xce7   : > { %1874 = vst.msk [vmem:[#allocation2] sm:$0xff] %vm1010_vm8, %v1872_v10 }
 0xce8   : > { %v1861_v12 = vsel %vm1860_vm11, %v2514_v2, %v1857_v11 }
 0xce9   : > { %v1863_v13 = vmul.f32 %v1861_v12, %v1829_v48 }
 0xceb   : > { %v1868_v14 = vmul.f32 %v2467_v5, %v1863_v13  ;;  %1879 = sbr.rel (%p2313_p1) target bundleno = 4026 (0xfba), region = 132 }
 0xced   : > { %v1873_v15 = vadd.f32 %v2468_v8, %v1868_v14 }
 0xcef   : > { %1875 = vst.msk [vmem:[#allocation2 + $0x8] sm:$0xff] %vm1010_vm8, %v1873_v15 }
 0xcf0   : > { %v1884_v16 = vld [vmem:[#allocation12 + $0x18] sm:$0xff]  ;;  %v1883_v17 = vld [vmem:[#allocation12 + $0x10] sm:$0xff]  ;;  %v1882_v18 = vld [vmem:[#allocation12 + $0x8] sm:$0xff]  ;;  %v2836_v29 = vmov 0   ;;  %vm1944_vm12 = vcmask 9216   ;;  %v1947_v39 = vlaneseq  ;;  %v2837_v42 = vmov 0.0  }
 0xcf1   : > { %1904 = vmatpush.msra.mxu0 %v1884_v16  ;;  %v1881_v19 = vld [vmem:[#allocation12] sm:$0xff]  ;;  %v1916_v21 = vld [vmem:[%s3474_s2 + $0x18] sm:$0xff]  ;;  %v1915_v22 = vld [vmem:[%s3474_s2 + $0x10] sm:$0xff]  ;;  %2515 = vset.pattern.permute.xlu0 %v2836_v29  ;;  %vm1972_vm13 = vcmask 1024   ;;  %v2838_v55 = vmov 2.0   ;;  %vm1993_vm15 = vcmask 0  }
 0xcf2   : > { %1936 = vmatpush.msra.mxu1 %v1916_v21  ;;  %v1914_v56 = vld [vmem:[%s3474_s2 + $0x8] sm:$0xff]  ;;  %v1913_v24 = vld [vmem:[%s3474_s2] sm:$0xff]  ;;  %v1948_v40 = vand.u32 127, %v1947_v39 }
 0xcf3   : > { %1905 = vmatpush.msra.mxu0 %v1883_v17  ;;  %v2516_v25 = vld [vmem:[%s3475_s25] ss:$0 sm:$0xff] }
 0xcf4   : > { %1937 = vmatpush.msra.mxu1 %v1915_v22  ;;  %v2517_v52 = vld [vmem:[%s3476_s19] ss:$0 sm:$0xff] }
 0xcf5   : > { %1906 = vmatpush.msra.mxu0 %v1882_v18  ;;  %v1946_v33 = vld [vmem:[%s3477_s5] sm:$0x3] }
 0xcf6   : > { %v1880_v20 = vld [vmem:[#allocation2] ss:$8 sm:$0x3]  ;;  %1938 = vmatpush.msra.mxu1 %v1914_v56 }
 0xcf7   : > { %1907 = vmatpush.msra.mxu0 %v1881_v19 }
 0xcf8   : > { %2314 = vmatmul.msk.f32.vlgmr.msra.gmra.mxu0 %vm1010_vm8, %v1880_v20  ;;  %1939 = vmatpush.msra.mxu1 %v1913_v24 }
 0xd75   : > { %v1909_v26 = vpop.f32.mrf.mxu0 }
 0xd76   : > { %v1910_v27 = vadd.f32 %v2516_v25, %v1909_v26 }
 0xd78   : > { %2518 = vtanh.f32 %v1910_v27 }
 0xd7e   : > { %v2519_v28 = vpop.eup %2518 }
 0xd7f   : > { %2315 = vmatmul.msk.f32.vlgmr.msra.gmra.mxu1 %vm1010_vm8, %v2519_v28 }
 0xdfc   : > { %v1941_v30 = vpop.f32.mrf.mxu1 }
 0xdfd   : > { %v1942_v31 = vadd.f32 %v2517_v52, %v1941_v30 }
 0xdff   : > { %v1955_v32 = vsel %vm1944_vm12, %v1942_v31, -inf  ;;  %1945 = vst.msk [vmem:[#allocation13] sm:$0x3] %vm1944_vm12, %v1942_v31 }
 0xe00   : > { %1956 = vmax.xlane.f32.xlu0 %v1955_v32 }
 0xe14   : > { %1950 = vperm.xlu0 %2515, %v1946_v33  }
 0xe73   : > { %v1957_v34 = vpop.xlane.xlu0 %1956 }
 0xe74   : > { %v1958_v35 = vsub.f32 %v1942_v31, %v1957_v34 }
 0xe76   : > { %v1959_v36 = vmul.f32 1.442695, %v1958_v35 }
 0xe78   : > { %2520 = vpow2.f32 %v1959_v36 }
 0xe7e   : > { %v2521_v37 = vpop.eup %2520 }
 0xe7f   : > { %v1961_v38 = vsel %vm1944_vm12, %v2521_v37, 0.0 }
 0xe80   : > { %1962 = vadd.xlane.f32.xlu1 %v1961_v38 }
 0xe86   : > { %v1951_v41 = vpop.permute.xlu0 %1950 }
 0xe87   : > { %vm1952_vm8 = vcmp.eq.s32.totalorder %v1948_v40, %v1951_v41 }
 0xe88   : > { %v2316_v43 = vsel %vm1952_vm8, 1.0, %v2837_v42 }
 0xe89   : > { %v1967_v44 = vmul.f32 %v2316_v43, %v1942_v31 }
 0xe8b   : > { %v1968_v45 = vsel %vm1944_vm12, %v1967_v44, 0.0 }
 0xe8c   : > { %1969 = vadd.xlane.f32.xlu1 %v1968_v45 }
 0xef3   : > { %v1963_v46 = vpop.xlane.xlu1 %1962 }
 0xef4   : > { %2522 = vlog2.f32 %v1963_v46 }
 0xef5   : > { %2524 = vrcp.f32 %v2838_v55 }
 0xefa   : > { %v2523_v47 = vpop.eup %2522 }
 0xefb   : > { %v1965_v48 = vmul.f32 0.6931472, %v2523_v47  ;;  %v2525_v57 = vpop.eup %2524 }
 0xefc   : > { %v1984_v58 = vmul.f32 2.0, %v2525_v57  ;;  %vm1988_vm14 = vweird.f32 %v2525_v57 }
 0xefd   : > { %v1966_v49 = vadd.f32 %v1965_v48, %v1957_v34 }
 0xefe   : > { %v1985_v59 = vsub.f32 1.0, %v1984_v58 }
 0xeff   : > { %v1970_v50 = vpop.xlane.xlu1 %1969 }
 0xf00   : > { %v1971_v53 = vsub.f32 %v1966_v49, %v1970_v50  ;;  %v1986_v0 = vmul.f32 %v2525_v57, %v1985_v59 }
 0xf02   : > { %v1973_v54 = vsel %vm1972_vm13, %v1971_v53, 0.0  ;;  %v1987_v3 = vadd.f32 %v2525_v57, %v1986_v0 }
 0xf03   : > { %1974 = vadd.xlane.f32.xlu2 %v1973_v54 }
 0xf04   : > { %v1989_v6 = vsel %vm1988_vm14, %v2525_v57, %v1987_v3 }
 0xf76   : > { %v1975_v60 = vpop.xlane.xlu2 %1974 }
 0xf77   : > { %v1976_v63 = vrot.slane %v1975_v60, 4 }
 0xf79   : > { %v1977_v23 = vadd.f32 %v1976_v63, %v1975_v60 }
 0xf7b   : > { %v1978_v1 = vrot.slane %v1977_v23, 2 }
 0xf7d   : > { %v1979_v2 = vadd.f32 %v1978_v1, %v1977_v23 }
 0xf7f   : > { %v1980_v4 = vrot.slane %v1979_v2, 1 }
 0xf81   : > { %v1981_v5 = vadd.f32 %v1980_v4, %v1979_v2 }
 0xf83   : > { %2338 = vpush %v1981_v5 }
 0xf84   : > { %2340 = vpush %v1989_v6 }
 0xfb4   : > { %s2339_s27 = spop %2338 }
 0xfb5   : > { %s2341_s13 = spop %2340 }
 0xfb6   : > { %s1991_s23 = smul.f32 %s2341_s13, %s2339_s27 }
 0xfb8   : > { %v1992_v7 = vstv %s1991_s23 }
 0xfb9   : > { %1994 = vst.msk [vmem:[#allocation14] sm:$0x1] %vm1993_vm15, %v1992_v7 }
 0xfba PF: > { %p2390_p4 = scmp.eq.s32.totalorder %s2975_s4, 1  ;;  %s2839_s16 = smov [#allocation13]  }
 0xfbb   : > { %s2001_s21 = sshll.u32 %s2839_s16, 4  ;;  %s3478_s30 = sld [smem:[#allocation44_spill]]  ;;  %s2002_s21 = int_to_ptr.vmem [resolvable:$true] %s2001_s21 }
 0xfbc   : > { %s3479_s18 = sld [smem:[#allocation45_spill]]  ;;  %s2840_s20 = smov [#allocation14]  }
 0xfbd   : > { %s2013_s25 = sshll.u32 %s2840_s20, 4  ;;  %s2014_s25 = int_to_ptr.vmem [resolvable:$true] %s2013_s25 }
 0xfc1   : > { %s2003_s3 = sshll.u32 %s3478_s30, 4  ;;  %s2004_s3 = int_to_ptr.hbm [resolvable:$true] %s2003_s3 }
 0xfc2   : > { %2359 = dma.vmem_to_hbm [thread:$0]  (%p2390_p4), %s2002_s21, 32, %s2004_s3, [#allocation7]  }
 0xfc3   : > { %s2015_s0 = sshll.u32 %s3479_s18, 4  ;;  %s2016_s0 = int_to_ptr.hbm [resolvable:$true] %s2015_s0 }
 0xfc4   : > { %2361 = dma.vmem_to_hbm [thread:$0]  (%p2390_p4), %s2014_s25, 16, %s2016_s0, [#allocation15]  }
 0xfc5   : > { %2791 = dma.done.wait (%p2390_p4), [#allocation7], 32  }
 0xfc6   : > { %2793 = vsyncadd (%p2390_p4), [#allocation7], 4294967264 }
 0xfc7   : > { %2795 = dma.done.wait (%p2390_p4), [#allocation15], 16  }
 0xfc8   : > { %2797 = vsyncadd (%p2390_p4), [#allocation15], 4294967280 }
 0xfc9 PF: > { %s3480_s30 = sld [smem:[#allocation27_spill]]  ;;  %s3482_s3 = smov %s2804_s28 }
 0xfca   : > { %s3481_s17 = sld [smem:[#allocation28_spill]]  ;;  %s3483_s28 = smov %s2808_s29 }
 0xfcf   : > { %p34_p5 = scmp.ge.s32.totalorder %s3480_s30, 4  }
 0xfd0   : > { %s3484_s29 = smov %s3481_s17 }
 0xfd1   :  { %36 = sbr.rel (!%p34_p5) target bundleno = 23 (0x17), region = 209 }
 0xfd6   :  { %2034 = vsyncpa [#allocation6], 1 }
 0xfd7   :  { %2036 = vsyncpa [#allocation6 + $0x1], 1 }
 0xfd8   :  { %2037 = vsyncpa [#allocation9], 1 }
 0xfd9   :  { %2038 = vsyncpa [#allocation7], 1 }
 0xfda   :  { %2040 = vsyncpa [#allocation7 + $0x1], 1 }
 0xfdb   :  { %2041 = vsyncpa [#allocation15], 1 }
 0xfdc   :  { %2042 = vsyncmov [#allocation4] }
 0xfdf   :  { %s2043_s4 = vpop.sfrf %2042 }
 0xfe0   :  { %p2323_p0 = scmp.ne.s32.totalorder %s2043_s4, 0 }
 0xfe2   :  { %2047 = shalt.err (%p2323_p0)  }

</bundles_post_ra>
